<compile_context>
chip_gen: v7x
topology: tpu7x:2x2x1
jax: 0.10.0
libtpu: 0.0.40
codegen_flags: <defaults>
</compile_context>

<pallas_src>
import functools

import jax
import jax.numpy as jnp
from jax import lax
from jax.experimental import pallas as pl
from jax.experimental.pallas import tpu as pltpu


_INV_SQRT2 = 0.7071067811865476


def _mlp_kernel(x_ref, w1_ref, b1_ref, w2_ref, b2_ref, o_ref, *, precision):
    # x_ref:  (Nb, C_in, T)          spatial tile, spatial on lanes
    # w1_ref: (n_chunks, HC, C_in)   resident first weight, hidden pre-chunked
    # b1_ref: (n_chunks, HC, 1)
    # w2_ref: (n_chunks, C_out, HC)  resident second weight
    # b2_ref: (C_out, 1)
    # o_ref:  (Nb, C_out, T)
    f32 = jnp.float32
    nb = x_ref.shape[0]
    n_chunks = w1_ref.shape[0]
    c_out = w2_ref.shape[1]
    t = x_ref.shape[-1]
    inv_sqrt2 = f32(_INV_SQRT2)

    b2 = b2_ref[...].astype(f32)  # hoisted: broadcasts over lanes per store

    def gelu_exact(h):
        # torch.nn.GELU default (erf form), kept in f32.
        return f32(0.5) * h * (f32(1.0) + lax.erf(h * inv_sqrt2))

    for b in range(nb):                      # short static unroll over batch block
        x = x_ref[b]                         # (C_in, T), native dtype -> MXU

        if n_chunks == 1:
            h = jnp.dot(w1_ref[0], x, precision=precision,
                        preferred_element_type=f32)            # (H_l, T) f32
            h = gelu_exact(h + b1_ref[0].astype(f32))
            y = jnp.dot(w2_ref[0], h.astype(w2_ref.dtype), precision=precision,
                        preferred_element_type=f32)            # (C_out, T) f32
        else:
            def chunk_step(c, acc):
                hc = jnp.dot(w1_ref[c], x, precision=precision,
                             preferred_element_type=f32)       # (HC, T) f32
                hc = gelu_exact(hc + b1_ref[c].astype(f32))
                return acc + jnp.dot(w2_ref[c], hc.astype(w2_ref.dtype),
                                     precision=precision,
                                     preferred_element_type=f32)
            y = lax.fori_loop(0, n_chunks, chunk_step,
                              jnp.zeros((c_out, t), f32))

        o_ref[b] = (y + b2).astype(o_ref.dtype)


def _vmem_budget_bytes():
    """Generation-aware VMEM budget: ~48 MiB on v7x (64 MiB), ~96 MiB on v5e/v6e."""
    try:
        cap = int(pltpu.get_tpu_info().vmem_capacity_bytes)
    except Exception:
        cap = 64 * 1024 * 1024  # conservative default (v7x per-TC size)
    return max(32 * 1024 * 1024, int(cap * 0.75))


def _choose_tiling(N, C_in, C_out, H_l, HW, bpe_x, bpe_w, vmem_budget):
    # Hidden-dim chunk: 256 feeds the 2x256^2 MXUs (v6e/v7x) and is a clean
    # multiple of v5e's 128-wide units; fall back to 128, else unchunked.
    if H_l > 512 and H_l % 256 == 0:
        chunk = 256
    elif H_l > 512 and H_l % 128 == 0:
        chunk = 128
    else:
        chunk = H_l
    n_chunks = H_l // chunk

    # Resident weights/biases (requested single-buffered via pl.Buffered(1)).
    weight_bytes = (H_l * C_in + C_out * H_l) * bpe_w + (H_l + C_out) * 4

    # VMEM bytes per lane-column of work per grid step:
    #   x block (double-buffered) + out block (double-buffered)
    #   + f32 hidden chunk (2x slack for temporaries) + f32 accumulator.
    per_lane = (2 * C_in + 2 * C_out) * bpe_x + (2 * chunk + C_out) * 4

    avail = vmem_budget - weight_bytes - (4 << 20)  # headroom
    max_lanes = 128
    if avail > 0:
        max_lanes = max(128, (avail // per_lane // 128) * 128)
    lane_cap = int(min(2048, max_lanes))            # 1024-2048 is past the HBM knee

    if HW <= lane_cap:
        t_hw = HW                                   # full-extent spatial block
        nb = max(1, min(N, lane_cap // max(1, HW))) # fold batch into the block
    else:
        t_hw = (min(lane_cap, HW) // 128) * 128     # lane-dense multiple of 128
        nb = 1

    # Megacore (v7x has 2 TCs): keep >= 2 grid blocks whenever splittable.
    if pl.cdiv(N, nb) * pl.cdiv(HW, t_hw) < 2:
        if nb > 1:
            nb = (nb + 1) // 2
        elif HW > 128 and t_hw > 128:
            t_hw = max(128, ((t_hw // 2) // 128) * 128)

    return nb, t_hw, chunk, n_chunks


def distributed_mlp_forward(x_nchw, w1, b1, w2, b2):
    """Forward pass of DistributedMLP (world_size=1, drop=0).

    x_nchw: (N, C_in, H, W);  w1: (H_l, C_in, 1, 1);  b1: (H_l,)
    w2: (C_out, H_l, 1, 1);   b2: (C_out,)           -> (N, C_out, H, W)
    """
    N, C_in, H, W = x_nchw.shape
    H_l = w1.shape[0]
    C_out = w2.shape[0]
    out_dtype = x_nchw.dtype
    HW = H * W

    # NCHW is already (N, C_in, H*W)-contiguous: pure reshape, no HBM copy.
    x3 = x_nchw.reshape(N, C_in, HW)

    bpe_x = jnp.dtype(x_nchw.dtype).itemsize
    bpe_w = jnp.dtype(w1.dtype).itemsize
    vmem_budget = _vmem_budget_bytes()
    nb, t_hw, chunk, n_chunks = _choose_tiling(
        N, C_in, C_out, H_l, HW, bpe_x, bpe_w, vmem_budget)

    # 1x1-conv kernels -> matrices, pre-split along the hidden dim so the
    # kernel only does leading-axis (dynamic) indexing of the chunks.
    w1m = w1[:, :, 0, 0]                                   # (H_l, C_in)
    w2m = w2[:, :, 0, 0]                                   # (C_out, H_l)
    w1r = w1m.reshape(n_chunks, chunk, C_in)               # free reshape
    b1r = b1.reshape(n_chunks, chunk, 1)                   # free reshape
    if n_chunks == 1:
        w2r = w2m[None]                                    # (1, C_out, H_l), free
    else:
        # One-time weight-sized copy; negligible vs activation traffic.
        w2r = jnp.transpose(w2m.reshape(C_out, n_chunks, chunk), (1, 0, 2))
    b2c = b2.reshape(C_out, 1)

    # Explicit MXU precision: bit-faithful for f32 operands, native otherwise.
    use_f32 = (jnp.dtype(x_nchw.dtype) == jnp.float32
               or jnp.dtype(w1.dtype) == jnp.float32)
    precision = lax.Precision.HIGHEST if use_f32 else lax.Precision.DEFAULT

    grid = (pl.cdiv(N, nb), pl.cdiv(HW, t_hw))

    cost = pl.CostEstimate(
        flops=int(2 * N * HW * C_in * H_l + 2 * N * HW * H_l * C_out),
        transcendentals=int(N * HW * H_l),
        bytes_accessed=int(N * HW * (C_in + C_out) * bpe_x
                           + (H_l * C_in + C_out * H_l) * bpe_w
                           + (H_l + C_out) * 4),
    )

    kernel = functools.partial(_mlp_kernel, precision=precision)

    def run(single_buffer_weights):
        # Constant-index weights don't need the default double buffer.
        wmode = ({"pipeline_mode": pl.Buffered(1)}
                 if single_buffer_weights else {})
        in_specs = [
            pl.BlockSpec((nb, C_in, t_hw), lambda n, s: (n, 0, s)),
            pl.BlockSpec((n_chunks, chunk, C_in), lambda n, s: (0, 0, 0), **wmode),
            pl.BlockSpec((n_chunks, chunk, 1), lambda n, s: (0, 0, 0), **wmode),
            pl.BlockSpec((n_chunks, C_out, chunk), lambda n, s: (0, 0, 0), **wmode),
            pl.BlockSpec((C_out, 1), lambda n, s: (0, 0), **wmode),
        ]
        return pl.pallas_call(
            kernel,
            out_shape=jax.ShapeDtypeStruct((N, C_out, HW), out_dtype),
            grid=grid,
            in_specs=in_specs,
            out_specs=pl.BlockSpec((nb, C_out, t_hw), lambda n, s: (n, 0, s)),
            compiler_params=pltpu.CompilerParams(
                dimension_semantics=("parallel", "parallel"),
                vmem_limit_bytes=int(vmem_budget),
            ),
            cost_estimate=cost,
        )(x3, w1r, b1r, w2r, b2c)

    try:
        out3 = run(True)
    except Exception:
        # Fallback for JAX versions where pipeline_mode / Buffered(1) is not
        # accepted: identical kernel, default (double) buffering of weights.
        out3 = run(False)

    return out3.reshape(N, C_out, H, W)

    # TODO(synk): world_size>1 gather/copy/reduce/scatter parallel-region
    # collectives are distributed-comm glue (not exercised at world_size=1);
    # they would map to pltpu.make_async_remote_copy ring collectives.


def _reference_forward(x_nchw, w1, b1, w2, b2):
    # Pure-JAX reference mirroring the PyTorch forward (world_size=1, drop=0).
    f32 = jnp.float32
    xf = x_nchw.astype(f32)
    w1m = w1[:, :, 0, 0].astype(f32)
    w2m = w2[:, :, 0, 0].astype(f32)
    h = (jnp.einsum("nchw,oc->nohw", xf, w1m, precision="highest")
         + b1.astype(f32)[None, :, None, None])
    h = 0.5 * h * (1.0 + lax.erf(h * f32(_INV_SQRT2)))
    y = (jnp.einsum("nchw,oc->nohw", h, w2m, precision="highest")
         + b2.astype(f32)[None, :, None, None])
    return y.astype(x_nchw.dtype)


if __name__ == "__main__":
    key = jax.random.PRNGKey(0)

    def make_case(k, N, C_in, H, W, hidden, C_out, dtype=jnp.float32):
        kx, kw1, kb1, kw2, kb2 = jax.random.split(k, 5)
        x = jax.random.normal(kx, (N, C_in, H, W), dtype=dtype)
        # trunc_normal_(std=0.02) weights (like _init_weights); small nonzero
        # biases so the bias-add paths are actually exercised.
        w1 = (jax.random.truncated_normal(
            kw1, -2.0, 2.0, (hidden, C_in, 1, 1), dtype=jnp.float32) * 0.02
              ).astype(dtype)
        b1 = (jax.random.normal(kb1, (hidden,), dtype=jnp.float32) * 0.02
              ).astype(dtype)
        w2 = (jax.random.truncated_normal(
            kw2, -2.0, 2.0, (C_out, hidden, 1, 1), dtype=jnp.float32) * 0.02
              ).astype(dtype)
        b2 = (jax.random.normal(kb2, (C_out,), dtype=jnp.float32) * 0.02
              ).astype(dtype)
        return x, w1, b1, w2, b2

    cases = [
        # (N, C_in, H, W, hidden_features, out_features)
        (2, 4, 16, 16, 32, 4),    # small module defaults; unchunked hidden
        (4, 4, 16, 16, 768, 8),   # hidden-chunked path (3 x 256), batch folded
        (1, 4, 48, 48, 256, 4),   # partial last spatial block, 2 spatial blocks
    ]
    for idx, (N, C_in, H, W, hid, C_out) in enumerate(cases):
        key, sub = jax.random.split(key)
        x, w1, b1, w2, b2 = make_case(sub, N, C_in, H, W, hid, C_out)
        out = jax.block_until_ready(distributed_mlp_forward(x, w1, b1, w2, b2))
        ref = _reference_forward(x, w1, b1, w2, b2)
        assert out.shape == (N, C_out, H, W), (idx, out.shape)
        max_err = float(jnp.max(jnp.abs(out.astype(jnp.float32)
                                        - ref.astype(jnp.float32))))
        assert max_err < 2e-5, (idx, max_err)

    print("KERNEL_OK")
</pallas_src>

<mosaic_0001>
module attributes {stable_mosaic.version = 11 : i64} {
  func.func @_mlp_kernel(%arg0: i32, %arg1: i32, %arg2: memref<1x4x256xf32, #tpu.memory_space<vmem>>, %arg3: memref<1x32x4xf32, #tpu.memory_space<vmem>>, %arg4: memref<1x32x1xf32, #tpu.memory_space<vmem>>, %arg5: memref<1x4x32xf32, #tpu.memory_space<vmem>>, %arg6: memref<4x1xf32, #tpu.memory_space<vmem>>, %arg7: memref<1x4x256xf32, #tpu.memory_space<vmem>>) attributes {dimension_semantics = [#tpu.dimension_semantics<parallel>, #tpu.dimension_semantics<parallel>], iteration_bounds = array<i64: 2, 1>, scalar_prefetch = 0 : i64, scratch_operands = 0 : i64, tpu.core_type = #tpu.core_type<tc>, window_params = [{transform_indices = @transform_0, window_bounds = array<i64: 1, 4, 256>}, {pipeline_mode = #tpu.pipeline_mode<synchronous>, transform_indices = @transform_1, window_bounds = array<i64: 1, 32, 4>}, {pipeline_mode = #tpu.pipeline_mode<synchronous>, transform_indices = @transform_2, window_bounds = array<i64: 1, 32, 1>}, {pipeline_mode = #tpu.pipeline_mode<synchronous>, transform_indices = @transform_3, window_bounds = array<i64: 1, 4, 32>}, {pipeline_mode = #tpu.pipeline_mode<synchronous>, transform_indices = @transform_4, window_bounds = array<i64: 4, 1>}, {transform_indices = @transform_5, window_bounds = array<i64: 1, 4, 256>}]} {
    %c0 = arith.constant 0 : index
    %c0_0 = arith.constant 0 : index
    %0 = vector.load %arg6[%c0, %c0_0] : memref<4x1xf32, #tpu.memory_space<vmem>>, vector<4x1xf32>
    %c0_1 = arith.constant 0 : index
    %c0_2 = arith.constant 0 : index
    %c0_3 = arith.constant 0 : index
    %1 = vector.load %arg2[%c0_1, %c0_2, %c0_3] : memref<1x4x256xf32, #tpu.memory_space<vmem>>, vector<1x4x256xf32>
    %2 = vector.shape_cast %1 : vector<1x4x256xf32> to vector<4x256xf32>
    %c0_4 = arith.constant 0 : index
    %c0_5 = arith.constant 0 : index
    %c0_6 = arith.constant 0 : index
    %3 = vector.load %arg3[%c0_4, %c0_5, %c0_6] : memref<1x32x4xf32, #tpu.memory_space<vmem>>, vector<1x32x4xf32>
    %4 = vector.shape_cast %3 : vector<1x32x4xf32> to vector<32x4xf32>
    %cst = arith.constant dense<0.000000e+00> : vector<32x256xf32>
    %5 = tpu.matmul %4, %2, %cst {dimension_numbers = #tpu.dot_dimension_numbers<[1], [0], [0], [1], [0, 0, 1, 1], [], []>, precision = #tpu.contract_precision<fp32>} : vector<32x4xf32>, vector<4x256xf32>, vector<32x256xf32> -> vector<32x256xf32>
    %c0_7 = arith.constant 0 : index
    %c0_8 = arith.constant 0 : index
    %c0_9 = arith.constant 0 : index
    %6 = vector.load %arg4[%c0_7, %c0_8, %c0_9] : memref<1x32x1xf32, #tpu.memory_space<vmem>>, vector<1x32x1xf32>
    %7 = vector.shape_cast %6 : vector<1x32x1xf32> to vector<32x1xf32>
    %8 = vector.broadcast %7 : vector<32x1xf32> to vector<32x256xf32>
    %9 = arith.addf %5, %8 : vector<32x256xf32>
    %cst_10 = arith.constant 5.000000e-01 : f32
    %10 = vector.broadcast %cst_10 : f32 to vector<32x256xf32>
    %11 = arith.mulf %10, %9 : vector<32x256xf32>
    %cst_11 = arith.constant 0.707106769 : f32
    %12 = vector.broadcast %cst_11 : f32 to vector<32x256xf32>
    %13 = arith.mulf %9, %12 : vector<32x256xf32>
    %14 = math.erf %13 : vector<32x256xf32>
    %cst_12 = arith.constant 1.000000e+00 : f32
    %15 = vector.broadcast %cst_12 : f32 to vector<32x256xf32>
    %16 = arith.addf %15, %14 : vector<32x256xf32>
    %17 = arith.mulf %11, %16 : vector<32x256xf32>
    %c0_13 = arith.constant 0 : index
    %c0_14 = arith.constant 0 : index
    %c0_15 = arith.constant 0 : index
    %18 = vector.load %arg5[%c0_13, %c0_14, %c0_15] : memref<1x4x32xf32, #tpu.memory_space<vmem>>, vector<1x4x32xf32>
    %19 = vector.shape_cast %18 : vector<1x4x32xf32> to vector<4x32xf32>
    %cst_16 = arith.constant dense<0.000000e+00> : vector<4x256xf32>
    %20 = tpu.matmul %19, %17, %cst_16 {dimension_numbers = #tpu.dot_dimension_numbers<[1], [0], [0], [1], [0, 0, 1, 1], [], []>, precision = #tpu.contract_precision<fp32>} : vector<4x32xf32>, vector<32x256xf32>, vector<4x256xf32> -> vector<4x256xf32>
    %21 = vector.broadcast %0 : vector<4x1xf32> to vector<4x256xf32>
    %22 = arith.addf %20, %21 : vector<4x256xf32>
    %c0_17 = arith.constant 0 : index
    %c0_18 = arith.constant 0 : index
    %c0_19 = arith.constant 0 : index
    %23 = vector.load %arg7[%c0_17, %c0_18, %c0_19] : memref<1x4x256xf32, #tpu.memory_space<vmem>>, vector<1x4x256xf32>
    %24 = vector.shape_cast %23 : vector<1x4x256xf32> to vector<4x256xf32>
    %25 = vector.shape_cast %22 : vector<4x256xf32> to vector<1x4x256xf32>
    tpu.vector_store %arg7[%c0_17, %c0_18, %c0_19], %25 {strides = array<i32>} : memref<1x4x256xf32, #tpu.memory_space<vmem>>, vector<1x4x256xf32>,
    return
  }
  func.func @transform_0(%arg0: i32, %arg1: i32) -> (i32, i32, i32) {
    %c0_i32 = arith.constant 0 : i32
    %c0_i32_0 = arith.constant 0 : i32
    return %arg0, %c0_i32, %arg1 : i32, i32, i32
  }
  func.func @transform_1(%arg0: i32, %arg1: i32) -> (i32, i32, i32) {
    %c0_i32 = arith.constant 0 : i32
    %c0_i32_0 = arith.constant 0 : i32
    %c0_i32_1 = arith.constant 0 : i32
    %c0_i32_2 = arith.constant 0 : i32
    return %c0_i32, %c0_i32_0, %c0_i32_1 : i32, i32, i32
  }
  func.func @transform_2(%arg0: i32, %arg1: i32) -> (i32, i32, i32) {
    %c0_i32 = arith.constant 0 : i32
    %c0_i32_0 = arith.constant 0 : i32
    %c0_i32_1 = arith.constant 0 : i32
    %c0_i32_2 = arith.constant 0 : i32
    return %c0_i32, %c0_i32_0, %c0_i32_1 : i32, i32, i32
  }
  func.func @transform_3(%arg0: i32, %arg1: i32) -> (i32, i32, i32) {
    %c0_i32 = arith.constant 0 : i32
    %c0_i32_0 = arith.constant 0 : i32
    %c0_i32_1 = arith.constant 0 : i32
    %c0_i32_2 = arith.constant 0 : i32
    return %c0_i32, %c0_i32_0, %c0_i32_1 : i32, i32, i32
  }
  func.func @transform_4(%arg0: i32, %arg1: i32) -> (i32, i32) {
    %c0_i32 = arith.constant 0 : i32
    %c0_i32_0 = arith.constant 0 : i32
    %c0_i32_1 = arith.constant 0 : i32
    return %c0_i32, %c0_i32_0 : i32, i32
  }
  func.func @transform_5(%arg0: i32, %arg1: i32) -> (i32, i32, i32) {
    %c0_i32 = arith.constant 0 : i32
    %c0_i32_0 = arith.constant 0 : i32
    return %arg0, %c0_i32, %arg1 : i32, i32, i32
  }
}

module attributes {stable_mosaic.version = 11 : i64} {
  func.func @_mlp_kernel(%arg0: i32, %arg1: i32, %arg2: memref<1x4x256xf32, #tpu.memory_space<vmem>>, %arg3: memref<1x32x4xf32, #tpu.memory_space<vmem>>, %arg4: memref<1x32x1xf32, #tpu.memory_space<vmem>>, %arg5: memref<1x4x32xf32, #tpu.memory_space<vmem>>, %arg6: memref<4x1xf32, #tpu.memory_space<vmem>>, %arg7: memref<1x4x256xf32, #tpu.memory_space<vmem>>) attributes {dimension_semantics = [#tpu.dimension_semantics<parallel>, #tpu.dimension_semantics<parallel>], iteration_bounds = array<i64: 2, 1>, scalar_prefetch = 0 : i64, scratch_operands = 0 : i64, tpu.core_type = #tpu.core_type<tc>, window_params = [{transform_indices = @transform_0, window_bounds = array<i64: 1, 4, 256>}, {pipeline_mode = #tpu.pipeline_mode<synchronous>, transform_indices = @transform_1, window_bounds = array<i64: 1, 32, 4>}, {pipeline_mode = #tpu.pipeline_mode<synchronous>, transform_indices = @transform_2, window_bounds = array<i64: 1, 32, 1>}, {pipeline_mode = #tpu.pipeline_mode<synchronous>, transform_indices = @transform_3, window_bounds = array<i64: 1, 4, 32>}, {pipeline_mode = #tpu.pipeline_mode<synchronous>, transform_indices = @transform_4, window_bounds = array<i64: 4, 1>}, {transform_indices = @transform_5, window_bounds = array<i64: 1, 4, 256>}]} {
    %c0 = arith.constant 0 : index
    %c0_0 = arith.constant 0 : index
    %0 = vector.load %arg6[%c0, %c0_0] : memref<4x1xf32, #tpu.memory_space<vmem>>, vector<4x1xf32>
    %c0_1 = arith.constant 0 : index
    %c0_2 = arith.constant 0 : index
    %c0_3 = arith.constant 0 : index
    %1 = vector.load %arg2[%c0_1, %c0_2, %c0_3] : memref<1x4x256xf32, #tpu.memory_space<vmem>>, vector<1x4x256xf32>
    %2 = vector.shape_cast %1 : vector<1x4x256xf32> to vector<4x256xf32>
    %c0_4 = arith.constant 0 : index
    %c0_5 = arith.constant 0 : index
    %c0_6 = arith.constant 0 : index
    %3 = vector.load %arg3[%c0_4, %c0_5, %c0_6] : memref<1x32x4xf32, #tpu.memory_space<vmem>>, vector<1x32x4xf32>
    %4 = vector.shape_cast %3 : vector<1x32x4xf32> to vector<32x4xf32>
    %cst = arith.constant dense<0.000000e+00> : vector<32x256xf32>
    %5 = tpu.matmul %4, %2, %cst {dimension_numbers = #tpu.dot_dimension_numbers<[1], [0], [0], [1], [0, 0, 1, 1], [], []>, precision = #tpu.contract_precision<fp32>} : vector<32x4xf32>, vector<4x256xf32>, vector<32x256xf32> -> vector<32x256xf32>
    %c0_7 = arith.constant 0 : index
    %c0_8 = arith.constant 0 : index
    %c0_9 = arith.constant 0 : index
    %6 = vector.load %arg4[%c0_7, %c0_8, %c0_9] : memref<1x32x1xf32, #tpu.memory_space<vmem>>, vector<1x32x1xf32>
    %7 = vector.shape_cast %6 : vector<1x32x1xf32> to vector<32x1xf32>
    %8 = vector.broadcast %7 : vector<32x1xf32> to vector<32x256xf32>
    %9 = arith.addf %5, %8 : vector<32x256xf32>
    %cst_10 = arith.constant 5.000000e-01 : f32
    %10 = vector.broadcast %cst_10 : f32 to vector<32x256xf32>
    %11 = arith.mulf %10, %9 : vector<32x256xf32>
    %cst_11 = arith.constant 0.707106769 : f32
    %12 = vector.broadcast %cst_11 : f32 to vector<32x256xf32>
    %13 = arith.mulf %9, %12 : vector<32x256xf32>
    %14 = math.erf %13 : vector<32x256xf32>
    %cst_12 = arith.constant 1.000000e+00 : f32
    %15 = vector.broadcast %cst_12 : f32 to vector<32x256xf32>
    %16 = arith.addf %15, %14 : vector<32x256xf32>
    %17 = arith.mulf %11, %16 : vector<32x256xf32>
    %c0_13 = arith.constant 0 : index
    %c0_14 = arith.constant 0 : index
    %c0_15 = arith.constant 0 : index
    %18 = vector.load %arg5[%c0_13, %c0_14, %c0_15] : memref<1x4x32xf32, #tpu.memory_space<vmem>>, vector<1x4x32xf32>
    %19 = vector.shape_cast %18 : vector<1x4x32xf32> to vector<4x32xf32>
    %cst_16 = arith.constant dense<0.000000e+00> : vector<4x256xf32>
    %20 = tpu.matmul %19, %17, %cst_16 {dimension_numbers = #tpu.dot_dimension_numbers<[1], [0], [0], [1], [0, 0, 1, 1], [], []>, precision = #tpu.contract_precision<fp32>} : vector<4x32xf32>, vector<32x256xf32>, vector<4x256xf32> -> vector<4x256xf32>
    %21 = vector.broadcast %0 : vector<4x1xf32> to vector<4x256xf32>
    %22 = arith.addf %20, %21 : vector<4x256xf32>
    %c0_17 = arith.constant 0 : index
    %c0_18 = arith.constant 0 : index
    %c0_19 = arith.constant 0 : index
    %23 = vector.load %arg7[%c0_17, %c0_18, %c0_19] : memref<1x4x256xf32, #tpu.memory_space<vmem>>, vector<1x4x256xf32>
    %24 = vector.shape_cast %23 : vector<1x4x256xf32> to vector<4x256xf32>
    %25 = vector.shape_cast %22 : vector<4x256xf32> to vector<1x4x256xf32>
    tpu.vector_store %arg7[%c0_17, %c0_18, %c0_19], %25 {strides = array<i32>} : memref<1x4x256xf32, #tpu.memory_space<vmem>>, vector<1x4x256xf32>,
    return
  }
  func.func @transform_0(%arg0: i32, %arg1: i32) -> (i32, i32, i32) {
    %c0_i32 = arith.constant 0 : i32
    %c0_i32_0 = arith.constant 0 : i32
    return %arg0, %c0_i32, %arg1 : i32, i32, i32
  }
  func.func @transform_1(%arg0: i32, %arg1: i32) -> (i32, i32, i32) {
    %c0_i32 = arith.constant 0 : i32
    %c0_i32_0 = arith.constant 0 : i32
    %c0_i32_1 = arith.constant 0 : i32
    %c0_i32_2 = arith.constant 0 : i32
    return %c0_i32, %c0_i32_0, %c0_i32_1 : i32, i32, i32
  }
  func.func @transform_2(%arg0: i32, %arg1: i32) -> (i32, i32, i32) {
    %c0_i32 = arith.constant 0 : i32
    %c0_i32_0 = arith.constant 0 : i32
    %c0_i32_1 = arith.constant 0 : i32
    %c0_i32_2 = arith.constant 0 : i32
    return %c0_i32, %c0_i32_0, %c0_i32_1 : i32, i32, i32
  }
  func.func @transform_3(%arg0: i32, %arg1: i32) -> (i32, i32, i32) {
    %c0_i32 = arith.constant 0 : i32
    %c0_i32_0 = arith.constant 0 : i32
    %c0_i32_1 = arith.constant 0 : i32
    %c0_i32_2 = arith.constant 0 : i32
    return %c0_i32, %c0_i32_0, %c0_i32_1 : i32, i32, i32
  }
  func.func @transform_4(%arg0: i32, %arg1: i32) -> (i32, i32) {
    %c0_i32 = arith.constant 0 : i32
    %c0_i32_0 = arith.constant 0 : i32
    %c0_i32_1 = arith.constant 0 : i32
    return %c0_i32, %c0_i32_0 : i32, i32
  }
  func.func @transform_5(%arg0: i32, %arg1: i32) -> (i32, i32, i32) {
    %c0_i32 = arith.constant 0 : i32
    %c0_i32_0 = arith.constant 0 : i32
    return %arg0, %c0_i32, %arg1 : i32, i32, i32
  }
}

</mosaic_0001>

<bundles_post_ra>
// kernel: tpu_custom_call.1
= control target key start
LH: loop header
LB: loop body
LE: loop exit
PB: predicated region body
PF: predicated region fallthrough
CT: control target
= control target key end

     0   :  { %10 = vsyncpa [#allocation3], 0  ;;  %s2195_s0 = inlined_call_operand.vmem [shape: f32[2,4,256], index: 0, kind: input, shape index: {}]   ;;  %s2196_s1 = inlined_call_operand.vmem [shape: f32[1,32,4], index: 1, kind: input, shape index: {}]   ;;  %s2197_s2 = inlined_call_operand.vmem [shape: f32[1,32,1], index: 2, kind: input, shape index: {}]   ;;  %s2198_s3 = inlined_call_operand.vmem [shape: f32[1,4,32], index: 3, kind: input, shape index: {}]   ;;  %s2199_s4 = inlined_call_operand.vmem [shape: f32[4,1], index: 4, kind: input, shape index: {}]   ;;  %s2200_s5 = inlined_call_operand.hbm [shape: f32[2,4,256], index: 5, kind: output, shape index: {}]  }
   0x1   :  { %12 = vsyncpa [#allocation3 + $0x1], 0  ;;  %s1921_s18 = smov 0   ;;  %s1923_s19 = smov 0  }
   0x2   :  { %s1925_s20 = smov 0   ;;  %s1927_s21 = smov 0  }
   0x3   :  { %s1929_s22 = smov 0   ;;  %s1931_s23 = smov 0  }
   0x4 LB: > { %s1607_s24 = sadd.s32 4294967295, %s1886_s23   ;;  %s1608_s25 = sadd.s32 4294967294, %s1886_s23   ;;  %s1886_s23 = sphi %s1931_s23, %s18_s23   ;;  %s1882_s22 = sphi %s1929_s22, %s2207_s22   ;;  %s1878_s21 = sphi %s1927_s21, %s2206_s21   ;;  %s1874_s20 = sphi %s1925_s20, %s2205_s20   ;;  %s1870_s19 = sphi %s1923_s19, %s2204_s19   ;;  %s1866_s18 = sphi %s1921_s18, %s2203_s18  }
   0x5   : > { %s30_s26 = sadd.s32 1, %s1882_s22  ;;  %s151_s27 = sadd.s32 1, %s1874_s20 }
   0x6   : > { %p32_p0 = scmp.ge.s32.totalorder %s30_s26, 2  ;;  %p161_p1 = scmp.ne.s32.totalorder %s1874_s20, %s1870_s19 }
   0x7   : > { %p162_p2 = scmp.eq.s32.totalorder %s1607_s24, 1  ;;  %p167_p3 = scmp.ne.s32.totalorder %s1870_s19, %s1866_s18 }
   0x8   : > { %s2209_s26 = smov (%p32_p0, %s30_s26), 0  ;;  %p168_p5 = scmp.eq.s32.totalorder %s1608_s25, 1 }
   0x9   : > { %p1961_p4 = por %p162_p2, %p161_p1  ;;  %s146_s29 = ssub.s32 %s1882_s22, %s2209_s26 }
   0xa   : > { %p1611_p6 = scmp.ge.s32.totalorder %s1886_s23, 1  ;;  %p149_p7 = scmp.eq.s32.totalorder %s146_s29, 0 }
   0xb   : > { %p1968_p8 = por %p168_p5, %p167_p3  ;;  %p211_p9 = scmp.lt.s32.totalorder %s1886_s23, 3 }
   0xc   : > { %s1974_s6 = scalar_select %p149_p7, %s1874_s20, %s151_s27  }
   0xd   : > { %p212_p10 = pnand %p1611_p6, %p211_p9 }
   0xe   : > { %p244_p11 = scmp.lt.s32.totalorder (!%p212_p10), %s1878_s21, 1  ;;  %v256_v0 = vld [vmem:[%s2196_s1] sm:$0xff] (!%p212_p10)  ;;  %vm286_vm0 = vcmask (!%p212_p10), 31744   ;;  %v257_v1 = vld [vmem:[%s2196_s1 + $0x8] sm:$0xff] (!%p212_p10)  ;;  %v1888_v2 = vmov (!%p212_p10), 0.0   ;;  %v258_v5 = vld [vmem:[%s2196_s1 + $0x10] sm:$0xff] (!%p212_p10) }
   0xf   : > { %215 = sbr.rel (%p212_p10) target bundleno = 621 (0x26d), region = 40  ;;  %489 = vmatprep.mubr.f32.mxu0 (!%p212_p10), %v1888_v2  ;;  %v288_v3 = vsel (!%p212_p10), %vm286_vm0, %v256_v0, 0  ;;  %v291_v4 = vsel (!%p212_p10), %vm286_vm0, %v257_v1, 0  ;;  %370 = vmatprep.mubr.f32.mxu1 (!%p212_p10), %v1888_v2  ;;  %v260_v6 = vld [vmem:[%s2197_s2] sm:$0xff] (!%p212_p10)  ;;  %v294_v9 = vsel (!%p212_p10), %vm286_vm0, %v258_v5, 0  ;;  %v1889_v10 = vmov (!%p212_p10), 0  }
  0x10   : > { %v1994_v7 = vand.u32 (!%p212_p10), 4294901760, %v288_v3  ;;  %v1996_v8 = vand.u32 (!%p212_p10), 4294901760, %v291_v4  ;;  %1789 = vset.pattern.permute.xlu0 (!%p212_p10), %v1889_v10  ;;  %1790 = vset.pattern.permute.xlu1 (!%p212_p10), %v1889_v10  ;;  %v259_v11 = vld [vmem:[%s2196_s1 + $0x18] sm:$0xff] (!%p212_p10)  ;;  %v262_v12 = vld [vmem:[%s2197_s2 + $0x10] sm:$0xff] (!%p212_p10)  ;;  %vm299_vm1 = vcmask (!%p212_p10), 1043456   ;;  %v261_v15 = vld [vmem:[%s2197_s2 + $0x8] sm:$0xff] (!%p212_p10) }
  0x11   : > { %266 = vperm.xlu0 (!%p212_p10), %1789, %v260_v6   ;;  %276 = vperm.xlu1 (!%p212_p10), %1790, %v262_v12   ;;  %v2017_v16 = vand.u32 (!%p212_p10), 4294901760, %v294_v9  ;;  %v263_v17 = vld [vmem:[%s2197_s2 + $0x18] sm:$0xff] (!%p212_p10)  ;;  %v297_v19 = vsel (!%p212_p10), %vm286_vm0, %v259_v11, 0  ;;  %v254_v26 = vld [vmem:[%s2199_s4] sm:$0xf] (!%p212_p10)  ;;  %vm962_vm2 = vcmask (!%p212_p10), 261120  }
  0x12   : > { %v2006_v13 = vsub.f32 (!%p212_p10), %v288_v3, %v1994_v7  ;;  %v2009_v14 = vsub.f32 (!%p212_p10), %v291_v4, %v1996_v8  ;;  %v2038_v29 = vand.u32 (!%p212_p10), 4294901760, %v297_v19  ;;  %s240_s17 = sand.u32 (!%p212_p10), 1, %s1870_s19   ;;  %s1621_s25 = sshll.u32 (!%p212_p10), %s1878_s21, 7 }
  0x13   : > { %v2036_v28 = vsub.f32 (!%p212_p10), %v294_v9, %v2017_v16  ;;  %s1612_s24 = sshll.u32 (!%p212_p10), %s240_s17, 3  ;;  %s2148_s9 = scalar_lea.hbm (!%p212_p10), %s2200_s5, %s1621_s25 }
  0x14   : > { %v373_v20 = vand.u32 (!%p212_p10), 4294901760, %v2006_v13  ;;  %v384_v21 = vand.u32 (!%p212_p10), 4294901760, %v2009_v14  ;;  %v405_v39 = vsub.f32 (!%p212_p10), %v297_v19, %v2038_v29 }
  0x15   : > { %271 = vperm.xlu0 (!%p212_p10), %1789, %v261_v15   ;;  %281 = vperm.xlu1 (!%p212_p10), %1790, %v263_v17   ;;  %v395_v36 = vand.u32 (!%p212_p10), 4294901760, %v2036_v28 }
  0x16   : > { %s245_s15 = scalar_select %p244_p11, %s1878_s21, 1  ;;  %v374_v25 = vsub.f32 %v2006_v13, %v373_v20  ;;  %v385_v33 = vsub.f32 %v2009_v14, %v384_v21  ;;  %v406_v42 = vand.u32 4294901760, %v405_v39 }
  0x17   : > { %v396_v43 = vsub.f32 %v2036_v28, %v395_v36  ;;  %s1890_s21 = smov [#allocation2]  }
  0x18   : > { %s1620_s27 = sshll.u32 %s245_s15, 3  ;;  %v375_v32 = vand.u32 4294901760, %v374_v25  ;;  %v386_v40 = vand.u32 4294901760, %v385_v33  ;;  %v407_v47 = vsub.f32 %v405_v39, %v406_v42  ;;  %s1812_s12 = sshll.u32 %s1890_s21, 4  ;;  %s1813_s12 = int_to_ptr.vmem [resolvable:$false] %s1812_s12 }
  0x19   : > { %s251_s10 = scalar_lea.vmem %s2195_s0, %s1620_s27  ;;  %959 = vperm.xlu0 %1789, %v254_v26   ;;  %v397_v46 = vand.u32 4294901760, %v396_v43  ;;  %s242_s27 = scalar_lea.vmem [#allocation2], %s1612_s24 }
  0x1a   : > { %v255_v18 = vld [vmem:[%s251_s10] sm:$0xff]  ;;  %v408_v48 = vand.u32 4294901760, %v407_v47  ;;  %s1531_s29 = sshll.u32 %s242_s27, 4  ;;  %s1515_s10 = scalar_lea.sflag [#allocation3], %s240_s17  ;;  %s2150_s29 = int_to_ptr.vmem [resolvable:$true] %s1531_s29 }
  0x1b   : > { %v285_v22 = vcombine.high %v255_v18, %v255_v18  ;;  %v300_v23 = vsel %vm299_vm1, %v255_v18, 0  ;;  %s1808_s11 = scalar_lea.vmem %s2150_s29, 128  ;;  %s1814_s13 = scalar_lea.vmem %s1813_s12, 256 }
  0x1c   : > { %v2026_v24 = vand.u32 4294901760, %v300_v23  ;;  %p1809_p12 = scmp.ne.s32.totalorder %s2150_s29, %s1808_s11  ;;  %p1815_p1 = scmp.lt.s32.totalorder %s2150_s29, %s1813_s12 }
  0x1d   : > { %v302_v27 = vsel %vm299_vm1, %v285_v22, 0  ;;  %p1816_p2 = scmp.lt.s32.totalorder %s1814_s13, %s1808_s11 }
  0x1e   : > { %v304_v30 = vand.u32 4294901760, %v302_v27  ;;  %v422_v31 = vsub.f32 %v300_v23, %v2026_v24  ;;  %p1810_p13 = pnand %p1809_p12, %p1961_p4 }
  0x1f   : > { %p1817_p3 = por %p1816_p2, %p1815_p1 }
  0x20   : > { %v416_v34 = vsub.f32 %v302_v27, %v304_v30  ;;  %v423_v35 = vand.u32 4294901760, %v422_v31  ;;  %305 = vmatprep.subr.mxu1 %v304_v30  ;;  %p1811_p0 = pneg %p1810_p13 }
  0x21   : > { %307 = vmatpush1.msra.mxu1 %v2026_v24 }
  0x22   : > { %v417_v37 = vand.u32 4294901760, %v416_v34  ;;  %v424_v38 = vsub.f32 %v422_v31, %v423_v35  ;;  %376 = vmatmul.mubr.f32.vlgmr.msra.gmra.mrb[0].mxu1 %v375_v32  ;;  %p1818_p5 = pnand %p1817_p3, %p1811_p0 }
  0x23   : > { %381 = vmatprep.mubr.f32.mxu1 %v1888_v2 }
  0x24   : > { %v418_v41 = vsub.f32 %v416_v34, %v417_v37  ;;  %v425_v44 = vand.u32 4294901760, %v424_v38 }
  0x26   : > { %v419_v45 = vand.u32 4294901760, %v418_v41  ;;  %387 = vmatmul.mubr.f32.gmra.mrb[2].mxu1 %v386_v40 }
  0x27   : > { %392 = vmatprep.mubr.f32.mxu1 %v1888_v2 }
  0x28   : > { %420 = vmatprep.subr.mxu0 %v419_v45  ;;  %1670 = vmatprep.subr.mxu1 %v419_v45 }
  0x29   : > { %426 = vmatpush1.msra.mxu0 %v425_v44  ;;  %1671 = vmatpush1.msra.mxu1 %v425_v44 }
  0x2a   : > { %491 = vmatmul.mubr.f32.vlgmr.msra.gmra.mrb[0].mxu0 %v1994_v7  ;;  %520 = vmatprep.subr.mxu0 %v416_v34 }
  0x2b   : > { %523 = vmatpush1.msra.mxu0 %v422_v31  ;;  %586 = vmatprep.mubr.f32.mxu0 %v1888_v2 }
  0x2c   : > { %620 = vmatprep.subr.mxu0 %v304_v30  ;;  %398 = vmatmul.mubr.f32.gmra.mrb[4].mxu1 %v397_v46 }
  0x2d   : > { %403 = vmatprep.mubr.f32.mxu1 %v1888_v2 }
  0x30   : > { %409 = vmatmul.mubr.f32.gmra.mrb[6].mxu1 %v408_v48 }
  0x31   : > { %496 = vmatprep.mubr.f32.mxu1 %v1888_v2 }
  0x32   : > { %589 = vmatmul.mubr.f32.vlgmr.msra.gmra.mrb[0].mxu0 %v2006_v13 }
  0x33   : > { %594 = vmatprep.mubr.f32.mxu0 %v1888_v2  ;;  %622 = vmatpush1.msra.mxu0 %v2026_v24 }
  0x34   : > { %725 = vmatprep.subr.mxu0 %v417_v37  ;;  %498 = vmatmul.mubr.f32.vlgmr.msra.gmra.mrb[2].mxu1 %v1996_v8 }
  0x35   : > { %503 = vmatprep.mubr.f32.mxu1 %v1888_v2 }
  0x36   : > { %597 = vmatmul.mubr.f32.gmra.mrb[2].mxu0 %v2009_v14 }
  0x37   : > { %602 = vmatprep.mubr.f32.mxu0 %v1888_v2 }
  0x38   : > { %505 = vmatmul.mubr.f32.gmra.mrb[4].mxu1 %v2017_v16 }
  0x39   : > { %510 = vmatprep.mubr.f32.mxu1 %v1888_v2 }
  0x3a   : > { %605 = vmatmul.mubr.f32.gmra.mrb[4].mxu0 %v2036_v28 }
  0x3b   : > { %610 = vmatprep.mubr.f32.mxu0 %v1888_v2 }
  0x3c   : > { %512 = vmatmul.mubr.f32.gmra.mrb[6].mxu1 %v2038_v29 }
  0x3d   : > { %1038 = vmatprep.mubr.f32.mxu1 %v1888_v2 }
  0x3e   : > { %613 = vmatmul.mubr.f32.gmra.mrb[6].mxu0 %v405_v39 }
  0x3f   : > { %685 = vmatprep.mubr.f32.mxu0 %v1888_v2 }
  0x42   : > { %689 = vmatmul.mubr.f32.vlgmr.msra.gmra.mrb[0].mxu0 %v373_v20 }
  0x43   : > { %694 = vmatprep.mubr.f32.mxu0 %v1888_v2  ;;  %729 = vmatpush1.msra.mxu0 %v423_v35 }
  0x44   : > { %822 = vmatprep.subr.mxu0 %v304_v30 }
  0x46   : > { %698 = vmatmul.mubr.f32.gmra.mrb[2].mxu0 %v384_v21 }
  0x47   : > { %703 = vmatprep.mubr.f32.mxu0 %v1888_v2 }
  0x4a   : > { %707 = vmatmul.mubr.f32.gmra.mrb[4].mxu0 %v395_v36 }
  0x4b   : > { %712 = vmatprep.mubr.f32.mxu0 %v1888_v2 }
  0x4e   : > { %716 = vmatmul.mubr.f32.gmra.mrb[6].mxu0 %v406_v42 }
  0x4f   : > { %792 = vmatprep.mubr.f32.mxu0 %v1888_v2 }
  0x52   : > { %794 = vmatmul.mubr.f32.vlgmr.msra.gmra.mrb[0].mxu0 %v1994_v7 }
  0x53   : > { %799 = vmatprep.mubr.f32.mxu0 %v1888_v2  ;;  %824 = vmatpush1.msra.mxu0 %v2026_v24 }
  0x56   : > { %801 = vmatmul.mubr.f32.gmra.mrb[2].mxu0 %v1996_v8 }
  0x57   : > { %806 = vmatprep.mubr.f32.mxu0 %v1888_v2 }
  0x5a   : > { %808 = vmatmul.mubr.f32.gmra.mrb[4].mxu0 %v2017_v16 }
  0x5b   : > { %813 = vmatprep.mubr.f32.mxu0 %v1888_v2 }
  0x5e   : > { %815 = vmatmul.mubr.f32.gmra.mrb[6].mxu0 %v2038_v29 }
  0x5f   : > { %887 = vmatprep.mubr.f32.mxu0 %v1888_v2 }
  0x62   : > { %889 = vmatmul.mubr.f32.vlgmr.msra.gmra.mrb[0].mxu0 %v1994_v7 }
  0x63   : > { %894 = vmatprep.mubr.f32.mxu0 %v1888_v2 }
  0x66   : > { %896 = vmatmul.mubr.f32.gmra.mrb[2].mxu0 %v1996_v8  ;;  %v956_v8 = vld [vmem:[%s2198_s3] sm:$0xf] }
  0x67   : > { %901 = vmatprep.mubr.f32.mxu0 %v1888_v2  ;;  %v964_v14 = vsel %vm962_vm2, %v956_v8, 0 }
  0x68   : > { %v2095_v22 = vand.u32 4294901760, %v964_v14 }
  0x6a   : > { %903 = vmatmul.mubr.f32.gmra.mrb[4].mxu0 %v2017_v16  ;;  %v2098_v31 = vsub.f32 %v964_v14, %v2095_v22 }
  0x6b   : > { %908 = vmatprep.mubr.f32.mxu0 %v1888_v2 }
  0x6c   : > { %v1041_v41 = vand.u32 4294901760, %v2098_v31 }
  0x6e   : > { %910 = vmatmul.mubr.f32.gmra.mrb[6].mxu0 %v2038_v29 }
  0x90   : > { %v267_v57 = vpop.permute.xlu0 %266  ;;  %v277_v0 = vpop.permute.xlu1 %276 }
  0x94   : > { %v272_v60 = vpop.permute.xlu0 %271  ;;  %v282_v16 = vpop.permute.xlu1 %281 }
  0xf5   : > { %v377_v49 = vpop.f32.mrb[0].mxu1 }
  0xf6   : > { %v379_v50 = vpop.f32.mrb[1].mxu1  ;;  %v378_v58 = vadd.f32 %v377_v49, %v267_v57 }
  0xf7   : > { %v380_v59 = vadd.f32 %v379_v50, %v267_v57 }
 0x107   : > { %v499_v51 = vpop.f32.mrb[2].mxu1 }
 0x108   : > { %v501_v52 = vpop.f32.mrb[3].mxu1  ;;  %v1676_v3 = vadd.f32 %v499_v51, %v272_v60 }
 0x109   : > { %v1678_v5 = vadd.f32 %v501_v52, %v272_v60 }
 0x10b   : > { %v506_v53 = vpop.f32.mrb[4].mxu1 }
 0x10c   : > { %v508_v54 = vpop.f32.mrb[5].mxu1  ;;  %v1680_v12 = vadd.f32 %v506_v53, %v277_v0  ;;  %v2106_v53 = vsub.f32 %v2098_v31, %v1041_v41 }
 0x10d   : > { %v1682_v15 = vadd.f32 %v508_v54, %v277_v0 }
 0x10f   : > { %v513_v55 = vpop.f32.mrb[6].mxu1 }
 0x110   : > { %v515_v56 = vpop.f32.mrb[7].mxu1  ;;  %v1684_v23 = vadd.f32 %v513_v55, %v282_v16 }
 0x111   : > { %v1686_v25 = vadd.f32 %v515_v56, %v282_v16 }
 0x135   : > { %v890_v61 = vpop.f32.mrb[0].mxu0 }
 0x136   : > { %v1673_v62 = vadd.f32 %v890_v61, %v378_v58  ;;  %v892_v63 = vpop.f32.mrb[1].mxu0 }
 0x137   : > { %v1675_v1 = vadd.f32 %v892_v63, %v380_v59 }
 0x138   : > { %v924_v4 = vmul.f32 0.70710677, %v1673_v62  ;;  %v916_v35 = vmul.f32 0.5, %v1673_v62 }
 0x139   : > { %v925_v6 = vmul.f32 0.70710677, %v1675_v1  ;;  %v897_v7 = vpop.f32.mrb[2].mxu0  ;;  %v917_v38 = vmul.f32 0.5, %v1675_v1 }
 0x13a   : > { %1792 = verf.f32 %v924_v4  ;;  %v1677_v9 = vadd.f32 %v1676_v3, %v897_v7  ;;  %v899_v10 = vpop.f32.mrb[3].mxu0 }
 0x13b   : > { %1794 = verf.f32 %v925_v6  ;;  %v1679_v11 = vadd.f32 %v1678_v5, %v899_v10 }
 0x13c   : > { %v926_v13 = vmul.f32 0.70710677, %v1677_v9  ;;  %v918_v46 = vmul.f32 0.5, %v1677_v9 }
 0x13d   : > { %v927_v17 = vmul.f32 0.70710677, %v1679_v11  ;;  %v904_v18 = vpop.f32.mrb[4].mxu0  ;;  %v919_v48 = vmul.f32 0.5, %v1679_v11 }
 0x13e   : > { %1796 = verf.f32 %v926_v13  ;;  %v1681_v19 = vadd.f32 %v1680_v12, %v904_v18  ;;  %v906_v20 = vpop.f32.mrb[5].mxu0 }
 0x13f   : > { %1798 = verf.f32 %v927_v17  ;;  %v1683_v21 = vadd.f32 %v1682_v15, %v906_v20 }
 0x140   : > { %v928_v24 = vmul.f32 0.70710677, %v1681_v19  ;;  %v920_v56 = vmul.f32 0.5, %v1681_v19 }
 0x141   : > { %v929_v26 = vmul.f32 0.70710677, %v1683_v21  ;;  %v911_v27 = vpop.f32.mrb[6].mxu0  ;;  %v921_v57 = vmul.f32 0.5, %v1683_v21 }
 0x142   : > { %1800 = verf.f32 %v928_v24  ;;  %v1685_v28 = vadd.f32 %v1684_v23, %v911_v27  ;;  %v913_v29 = vpop.f32.mrb[7].mxu0 }
 0x143   : > { %1802 = verf.f32 %v929_v26  ;;  %v1687_v30 = vadd.f32 %v1686_v25, %v913_v29 }
 0x144   : > { %v1793_v32 = vpop.eup %1792  ;;  %v930_v33 = vmul.f32 0.70710677, %v1685_v28  ;;  %v922_v63 = vmul.f32 0.5, %v1685_v28 }
 0x145   : > { %v1795_v34 = vpop.eup %1794  ;;  %v940_v36 = vadd.f32 1.0, %v1793_v32  ;;  %v931_v37 = vmul.f32 0.70710677, %v1687_v30  ;;  %v923_v1 = vmul.f32 0.5, %v1687_v30 }
 0x146   : > { %v941_v39 = vadd.f32 1.0, %v1795_v34  ;;  %1804 = verf.f32 %v930_v33 }
 0x147   : > { %v948_v40 = vmul.f32 %v940_v36, %v916_v35  ;;  %1806 = verf.f32 %v931_v37 }
 0x148   : > { %v1797_v42 = vpop.eup %1796  ;;  %v949_v43 = vmul.f32 %v941_v39, %v917_v38 }
 0x149   : > { %v1799_v44 = vpop.eup %1798  ;;  %v968_v45 = vand.u32 4294901760, %v948_v40  ;;  %v942_v47 = vadd.f32 1.0, %v1797_v42 }
 0x14a   : > { %v943_v49 = vadd.f32 1.0, %v1799_v44  ;;  %v966_v50 = vand.u32 4294901760, %v949_v43 }
 0x14b   : > { %v2101_v51 = vsub.f32 %v948_v40, %v968_v45  ;;  %v950_v52 = vmul.f32 %v942_v47, %v918_v46 }
 0x14c   : > { %v1801_v54 = vpop.eup %1800  ;;  %v951_v55 = vmul.f32 %v943_v49, %v919_v48  ;;  %v2108_v58 = vsub.f32 %v949_v43, %v966_v50 }
 0x14d   : > { %v1803_v59 = vpop.eup %1802  ;;  %v1058_v60 = vand.u32 4294901760, %v2101_v51  ;;  %v972_v61 = vand.u32 4294901760, %v950_v52  ;;  %v944_v62 = vadd.f32 1.0, %v1801_v54 }
 0x14e   : > { %v945_v0 = vadd.f32 1.0, %v1803_v59  ;;  %v970_v3 = vand.u32 4294901760, %v951_v55  ;;  %v1052_v4 = vand.u32 4294901760, %v2108_v58 }
 0x14f   : > { %v2112_v5 = vsub.f32 %v950_v52, %v972_v61  ;;  %v952_v6 = vmul.f32 %v944_v62, %v920_v56  ;;  %v2114_v7 = vpack.c.bf16 %v972_v61, %v968_v45  ;;  %v1059_v8 = vsub.f32 %v2101_v51, %v1058_v60 }
 0x150   : > { %v1805_v9 = vpop.eup %1804  ;;  %v953_v10 = vmul.f32 %v945_v0, %v921_v57  ;;  %v2117_v11 = vpack.c.bf16 %v970_v3, %v966_v50  ;;  %v1063_v12 = vsub.f32 %v951_v55, %v970_v3  ;;  %v1053_v13 = vsub.f32 %v2108_v58, %v1052_v4 }
 0x151   : > { %v1807_v14 = vpop.eup %1806  ;;  %v1070_v15 = vand.u32 4294901760, %v2112_v5  ;;  %v976_v16 = vand.u32 4294901760, %v952_v6  ;;  %v946_v17 = vadd.f32 1.0, %v1805_v9  ;;  %v1060_v18 = vand.u32 4294901760, %v1059_v8 }
 0x152   : > { %v947_v19 = vadd.f32 1.0, %v1807_v14  ;;  %1623 = vmatprep.subr.bf16.mxu1 %v2117_v11  ;;  %v974_v20 = vand.u32 4294901760, %v953_v10  ;;  %v1054_v21 = vand.u32 4294901760, %v1053_v13  ;;  %v1064_v23 = vand.u32 4294901760, %v1063_v12 }
 0x153   : > { %v1081_v24 = vsub.f32 %v952_v6, %v976_v16  ;;  %v954_v25 = vmul.f32 %v946_v17, %v922_v63  ;;  %1625 = vmatpush1.bf16.msra.mxu1 %v2114_v7  ;;  %v1071_v26 = vsub.f32 %v2112_v5, %v1070_v15  ;;  %v1638_v27 = vpack.c.bf16 %v1063_v12, %v2108_v58 }
 0x154   : > { %v955_v28 = vmul.f32 %v947_v19, %v923_v1  ;;  %v1075_v29 = vsub.f32 %v953_v10, %v974_v20  ;;  %v1065_v30 = vsub.f32 %v1063_v12, %v1064_v23  ;;  %v1640_v32 = vpack.c.bf16 %v2112_v5, %v2101_v51 }
 0x155   : > { %v1082_v33 = vand.u32 4294901760, %v1081_v24  ;;  %v980_v34 = vand.u32 4294901760, %v954_v25  ;;  %v1072_v35 = vand.u32 4294901760, %v1071_v26  ;;  %v1654_v36 = vpack.c.bf16 %v1064_v23, %v1052_v4 }
 0x156   : > { %v978_v37 = vand.u32 4294901760, %v955_v28  ;;  %v1066_v38 = vand.u32 4294901760, %v1065_v30  ;;  %v1076_v39 = vand.u32 4294901760, %v1075_v29  ;;  %v1656_v40 = vpack.c.bf16 %v1070_v15, %v1058_v60 }
 0x157   : > { %v1093_v42 = vsub.f32 %v954_v25, %v980_v34  ;;  %v1628_v43 = vpack.c.bf16 %v980_v34, %v976_v16  ;;  %v1632_v44 = vpack.c.bf16 %v1072_v35, %v1060_v18  ;;  %v1083_v49 = vsub.f32 %v1081_v24, %v1082_v33 }
 0x158   : > { %v1626_v45 = vpack.c.bf16 %v978_v37, %v974_v20  ;;  %v1087_v46 = vsub.f32 %v955_v28, %v978_v37  ;;  %v1630_v47 = vpack.c.bf16 %v1066_v38, %v1054_v21  ;;  %v1043_v51 = vand.u32 4294901760, %v2106_v53 }
 0x159   : > { %v1094_v48 = vand.u32 4294901760, %v1093_v42  ;;  %v1644_v50 = vpack.c.bf16 %v1093_v42, %v1081_v24  ;;  %v1077_v52 = vsub.f32 %v1075_v29, %v1076_v39  ;;  %v1084_v60 = vand.u32 4294901760, %v1083_v49 }
 0x15a   : > { %1627 = vmatprep.subr.bf16.mxu1 %v1626_v45  ;;  %v1088_v54 = vand.u32 4294901760, %v1087_v46  ;;  %v1642_v55 = vpack.c.bf16 %v1087_v46, %v1075_v29 }
 0x15b   : > { %1629 = vmatpush1.bf16.msra.mxu1 %v1628_v43  ;;  %v1095_v56 = vsub.f32 %v1093_v42, %v1094_v48  ;;  %v1660_v57 = vpack.c.bf16 %v1094_v48, %v1082_v33  ;;  %v1078_v62 = vand.u32 4294901760, %v1077_v52 }
 0x15c   : > { %1631 = vmatprep.subr.bf16.mxu1 %v1630_v47  ;;  %v1089_v58 = vsub.f32 %v1087_v46, %v1088_v54  ;;  %v1658_v59 = vpack.c.bf16 %v1088_v54, %v1076_v39 }
 0x15d   : > { %v1096_v61 = vand.u32 4294901760, %v1095_v56 }
 0x15e   : > { %1044 = vmatmul.mubr.f32.vlgmr.msra.gmra.mrb[8].mxu1 %v1043_v51  ;;  %v1090_v63 = vand.u32 4294901760, %v1089_v58 }
 0x15f   : > { %1633 = vmatpush1.bf16.msra.mxu1 %v1632_v44  ;;  %v1636_v0 = vpack.c.bf16 %v1096_v61, %v1084_v60  ;;  %1154 = vmatprep.mubr.f32.mxu1 %v1888_v2 }
 0x160   : > { %v1634_v1 = vpack.c.bf16 %v1090_v63, %v1078_v62 }
 0x162   : > { %1635 = vmatprep.subr.bf16.mxu1 %v1634_v1 }
 0x163   : > { %1637 = vmatpush1.bf16.msra.mxu1 %v1636_v0 }
 0x164   : > { %1639 = vmatprep.subr.bf16.mxu1 %v1638_v27 }
 0x166   : > { %1156 = vmatmul.mubr.f32.vlgmr.msra.gmra.mrb[8].mxu1 %v2095_v22 }
 0x167   : > { %1641 = vmatpush1.bf16.msra.mxu1 %v1640_v32  ;;  %1242 = vmatprep.mubr.f32.mxu1 %v1888_v2 }
 0x168   : > { %1643 = vmatprep.subr.bf16.mxu1 %v1642_v55 }
 0x16b   : > { %1645 = vmatpush1.bf16.msra.mxu1 %v1644_v50 }
 0x16c   : > { %1647 = vmatprep.subr.bf16.mxu1 %v2117_v11 }
 0x16e   : > { %1245 = vmatmul.mubr.f32.vlgmr.msra.gmra.mrb[8].mxu1 %v2098_v31  ;;  %v960_v31 = vpop.permute.xlu0 %959 }
 0x16f   : > { %1649 = vmatpush1.bf16.msra.mxu1 %v2114_v7  ;;  %1323 = vmatprep.mubr.f32.mxu1 %v1888_v2 }
 0x170   : > { %1651 = vmatprep.subr.bf16.mxu1 %v1626_v45 }
 0x173   : > { %1653 = vmatpush1.bf16.msra.mxu1 %v1628_v43 }
 0x174   : > { %1655 = vmatprep.subr.bf16.mxu1 %v1654_v36 }
 0x176   : > { %1327 = vmatmul.mubr.f32.vlgmr.msra.gmra.mrb[8].mxu1 %v1041_v41 }
 0x177   : > { %1657 = vmatpush1.bf16.msra.mxu1 %v1656_v40  ;;  %1421 = vmatprep.mubr.f32.mxu1 %v1888_v2 }
 0x178   : > { %1659 = vmatprep.subr.bf16.mxu1 %v1658_v59 }
 0x17b   : > { %1661 = vmatpush1.bf16.msra.mxu1 %v1660_v57 }
 0x17c   : > { %1663 = vmatprep.subr.bf16.mxu1 %v2117_v11 }
 0x17e   : > { %1423 = vmatmul.mubr.f32.vlgmr.msra.gmra.mrb[8].mxu1 %v2095_v22 }
 0x17f   : > { %1665 = vmatpush1.bf16.msra.mxu1 %v2114_v7  ;;  %1501 = vmatprep.mubr.f32.mxu1 %v1888_v2 }
 0x180   : > { %1667 = vmatprep.subr.bf16.mxu1 %v1626_v45 }
 0x183   : > { %1669 = vmatpush1.bf16.msra.mxu1 %v1628_v43 }
 0x186   : > { %1503 = vmatmul.mubr.f32.vlgmr.msra.gmra.mrb[8].mxu1 %v2095_v22 }
 0x259   : > { %v1504_v41 = vpop.f32.mrb[8].mxu1 }
 0x25a   : > { %v1688_v53 = vadd.f32 %v1504_v41, %v960_v31  ;;  %v1506_v3 = vpop.f32.mrb[9].mxu1 }
 0x25b   : > { %v1689_v4 = vadd.f32 %v1506_v3, %v960_v31 }
 0x25d   : > { %v1511_v5 = vcombine.low %v1688_v53, %v1689_v4 }
 0x25f   : > { %1513 = vst [vmem:[%s242_s27] sm:$0xff] %v1511_v5 }
 0x260   : > { %1821 = shalt.err (!%p1818_p5)
}
 0x261   : > { %s1822_s14 = scalar_lea.hbm %s2148_s9, 128  ;;  %s1826_s17 = scalar_lea.hbm %s2200_s5, 256 }
 0x262   : > { %p1823_p6 = scmp.ne.s32.totalorder %s2148_s9, %s1822_s14  ;;  %p1827_p10 = scmp.lt.u32.totalorder %s2148_s9, %s2200_s5 }
 0x263   : > { %p1828_p11 = scmp.lt.u32.totalorder %s1826_s17, %s1822_s14  ;;  %p1830_p13 = scmp.lt.u32.totalorder %s1822_s14, %s2148_s9 }
 0x264   : > { %p1824_p7 = pnand %p1823_p6, %p1961_p4 }
 0x265   : > { %p1829_p12 = por %p1828_p11, %p1827_p10 }
 0x266   : > { %p1825_p9 = pneg %p1824_p7 }
 0x267   : > { %p1831_p0 = por %p1830_p13, %p1829_p12 }
 0x269   : > { %p1832_p1 = pnand %p1831_p0, %p1825_p9 }
 0x26b   : > { %1835 = shalt.err (!%p1832_p1)
}
 0x26c   : > { %1732 = dma.vmem_to_hbm [thread:$0]  (%p1961_p4), %s2150_s29, 128, %s2148_s9, %s1515_s10  }
 0x26d PF: > { %p1738_p2 = scmp.ge.s32.totalorder %s1886_s23, 2  ;;  %s1543_s27 = sand.u32 1, %s1866_s18  }
 0x26e   : > { %s1544_s7 = scalar_lea.sflag [#allocation3], %s1543_s27 }
 0x26f   : > { %p1735_p3 = pnand %p1738_p2, %p1968_p8 }
 0x271   : > { %1861 = dma.done.wait (!%p1735_p3), %s1544_s7, 128  }
 0x272   : > { %1863 = vsyncadd (!%p1735_p3), %s1544_s7, 4294967168  ;;  %s18_s23 = sadd.s32 1, %s1886_s23   ;;  %s2203_s18 = smov %s1870_s19 }
 0x273   : > { %p15_p5 = scmp.ge.s32.totalorder %s18_s23, 4   ;;  %s2204_s19 = smov %s1874_s20 }
 0x274   : > { %s2205_s20 = smov %s1974_s6  ;;  %s2206_s21 = smov %s1882_s22 }
 0x275   : > { %s2207_s22 = smov %s2209_s26  ;;  %17 = sbr.rel (!%p15_p5) target bundleno = 4 (0x4), region = 75 }
 0x27c   :  { %1549 = vsyncpa [#allocation3], 1 }
 0x27d   :  { %1551 = vsyncpa [#allocation3 + $0x1], 1 }

// kernel: tpu_custom_call.1
= control target key start
LH: loop header
LB: loop body
LE: loop exit
PB: predicated region body
PF: predicated region fallthrough
CT: control target
= control target key end

     0   :  { %10 = vsyncpa [#allocation3], 0  ;;  %s2195_s0 = inlined_call_operand.vmem [shape: f32[2,4,256], index: 0, kind: input, shape index: {}]   ;;  %s2196_s1 = inlined_call_operand.vmem [shape: f32[1,32,4], index: 1, kind: input, shape index: {}]   ;;  %s2197_s2 = inlined_call_operand.vmem [shape: f32[1,32,1], index: 2, kind: input, shape index: {}]   ;;  %s2198_s3 = inlined_call_operand.vmem [shape: f32[1,4,32], index: 3, kind: input, shape index: {}]   ;;  %s2199_s4 = inlined_call_operand.vmem [shape: f32[4,1], index: 4, kind: input, shape index: {}]   ;;  %s2200_s5 = inlined_call_operand.hbm [shape: f32[2,4,256], index: 5, kind: output, shape index: {}]  }
   0x1   :  { %12 = vsyncpa [#allocation3 + $0x1], 0  ;;  %s1921_s18 = smov 0   ;;  %s1923_s19 = smov 0  }
   0x2   :  { %s1925_s20 = smov 0   ;;  %s1927_s21 = smov 0  }
   0x3   :  { %s1929_s22 = smov 0   ;;  %s1931_s23 = smov 0  }
   0x4 LB: > { %s1607_s24 = sadd.s32 4294967295, %s1886_s23   ;;  %s1608_s25 = sadd.s32 4294967294, %s1886_s23   ;;  %s1886_s23 = sphi %s1931_s23, %s18_s23   ;;  %s1882_s22 = sphi %s1929_s22, %s2207_s22   ;;  %s1878_s21 = sphi %s1927_s21, %s2206_s21   ;;  %s1874_s20 = sphi %s1925_s20, %s2205_s20   ;;  %s1870_s19 = sphi %s1923_s19, %s2204_s19   ;;  %s1866_s18 = sphi %s1921_s18, %s2203_s18  }
   0x5   : > { %s30_s26 = sadd.s32 1, %s1882_s22  ;;  %s151_s27 = sadd.s32 1, %s1874_s20 }
   0x6   : > { %p32_p0 = scmp.ge.s32.totalorder %s30_s26, 2  ;;  %p161_p1 = scmp.ne.s32.totalorder %s1874_s20, %s1870_s19 }
   0x7   : > { %p162_p2 = scmp.eq.s32.totalorder %s1607_s24, 1  ;;  %p167_p3 = scmp.ne.s32.totalorder %s1870_s19, %s1866_s18 }
   0x8   : > { %s2209_s26 = smov (%p32_p0, %s30_s26), 0  ;;  %p168_p5 = scmp.eq.s32.totalorder %s1608_s25, 1 }
   0x9   : > { %p1961_p4 = por %p162_p2, %p161_p1  ;;  %s146_s29 = ssub.s32 %s1882_s22, %s2209_s26 }
   0xa   : > { %p1611_p6 = scmp.ge.s32.totalorder %s1886_s23, 1  ;;  %p149_p7 = scmp.eq.s32.totalorder %s146_s29, 0 }
   0xb   : > { %p1968_p8 = por %p168_p5, %p167_p3  ;;  %p211_p9 = scmp.lt.s32.totalorder %s1886_s23, 3 }
   0xc   : > { %s1974_s6 = scalar_select %p149_p7, %s1874_s20, %s151_s27  }
   0xd   : > { %p212_p10 = pnand %p1611_p6, %p211_p9 }
   0xe   : > { %p244_p11 = scmp.lt.s32.totalorder (!%p212_p10), %s1878_s21, 1  ;;  %v256_v0 = vld [vmem:[%s2196_s1] sm:$0xff] (!%p212_p10)  ;;  %vm286_vm0 = vcmask (!%p212_p10), 31744   ;;  %v257_v1 = vld [vmem:[%s2196_s1 + $0x8] sm:$0xff] (!%p212_p10)  ;;  %v1888_v2 = vmov (!%p212_p10), 0.0   ;;  %v258_v5 = vld [vmem:[%s2196_s1 + $0x10] sm:$0xff] (!%p212_p10) }
   0xf   : > { %215 = sbr.rel (%p212_p10) target bundleno = 621 (0x26d), region = 40  ;;  %489 = vmatprep.mubr.f32.mxu0 (!%p212_p10), %v1888_v2  ;;  %v288_v3 = vsel (!%p212_p10), %vm286_vm0, %v256_v0, 0  ;;  %v291_v4 = vsel (!%p212_p10), %vm286_vm0, %v257_v1, 0  ;;  %370 = vmatprep.mubr.f32.mxu1 (!%p212_p10), %v1888_v2  ;;  %v260_v6 = vld [vmem:[%s2197_s2] sm:$0xff] (!%p212_p10)  ;;  %v294_v9 = vsel (!%p212_p10), %vm286_vm0, %v258_v5, 0  ;;  %v1889_v10 = vmov (!%p212_p10), 0  }
  0x10   : > { %v1994_v7 = vand.u32 (!%p212_p10), 4294901760, %v288_v3  ;;  %v1996_v8 = vand.u32 (!%p212_p10), 4294901760, %v291_v4  ;;  %1789 = vset.pattern.permute.xlu0 (!%p212_p10), %v1889_v10  ;;  %1790 = vset.pattern.permute.xlu1 (!%p212_p10), %v1889_v10  ;;  %v259_v11 = vld [vmem:[%s2196_s1 + $0x18] sm:$0xff] (!%p212_p10)  ;;  %v262_v12 = vld [vmem:[%s2197_s2 + $0x10] sm:$0xff] (!%p212_p10)  ;;  %vm299_vm1 = vcmask (!%p212_p10), 1043456   ;;  %v261_v15 = vld [vmem:[%s2197_s2 + $0x8] sm:$0xff] (!%p212_p10) }
  0x11   : > { %266 = vperm.xlu0 (!%p212_p10), %1789, %v260_v6   ;;  %276 = vperm.xlu1 (!%p212_p10), %1790, %v262_v12   ;;  %v2017_v16 = vand.u32 (!%p212_p10), 4294901760, %v294_v9  ;;  %v263_v17 = vld [vmem:[%s2197_s2 + $0x18] sm:$0xff] (!%p212_p10)  ;;  %v297_v19 = vsel (!%p212_p10), %vm286_vm0, %v259_v11, 0  ;;  %v254_v26 = vld [vmem:[%s2199_s4] sm:$0xf] (!%p212_p10)  ;;  %vm962_vm2 = vcmask (!%p212_p10), 261120  }
  0x12   : > { %v2006_v13 = vsub.f32 (!%p212_p10), %v288_v3, %v1994_v7  ;;  %v2009_v14 = vsub.f32 (!%p212_p10), %v291_v4, %v1996_v8  ;;  %v2038_v29 = vand.u32 (!%p212_p10), 4294901760, %v297_v19  ;;  %s240_s17 = sand.u32 (!%p212_p10), 1, %s1870_s19   ;;  %s1621_s25 = sshll.u32 (!%p212_p10), %s1878_s21, 7 }
  0x13   : > { %v2036_v28 = vsub.f32 (!%p212_p10), %v294_v9, %v2017_v16  ;;  %s1612_s24 = sshll.u32 (!%p212_p10), %s240_s17, 3  ;;  %s2148_s9 = scalar_lea.hbm (!%p212_p10), %s2200_s5, %s1621_s25 }
  0x14   : > { %v373_v20 = vand.u32 (!%p212_p10), 4294901760, %v2006_v13  ;;  %v384_v21 = vand.u32 (!%p212_p10), 4294901760, %v2009_v14  ;;  %v405_v39 = vsub.f32 (!%p212_p10), %v297_v19, %v2038_v29 }
  0x15   : > { %271 = vperm.xlu0 (!%p212_p10), %1789, %v261_v15   ;;  %281 = vperm.xlu1 (!%p212_p10), %1790, %v263_v17   ;;  %v395_v36 = vand.u32 (!%p212_p10), 4294901760, %v2036_v28 }
  0x16   : > { %s245_s15 = scalar_select %p244_p11, %s1878_s21, 1  ;;  %v374_v25 = vsub.f32 %v2006_v13, %v373_v20  ;;  %v385_v33 = vsub.f32 %v2009_v14, %v384_v21  ;;  %v406_v42 = vand.u32 4294901760, %v405_v39 }
  0x17   : > { %v396_v43 = vsub.f32 %v2036_v28, %v395_v36  ;;  %s1890_s21 = smov [#allocation2]  }
  0x18   : > { %s1620_s27 = sshll.u32 %s245_s15, 3  ;;  %v375_v32 = vand.u32 4294901760, %v374_v25  ;;  %v386_v40 = vand.u32 4294901760, %v385_v33  ;;  %v407_v47 = vsub.f32 %v405_v39, %v406_v42  ;;  %s1812_s12 = sshll.u32 %s1890_s21, 4  ;;  %s1813_s12 = int_to_ptr.vmem [resolvable:$false] %s1812_s12 }
  0x19   : > { %s251_s10 = scalar_lea.vmem %s2195_s0, %s1620_s27  ;;  %959 = vperm.xlu0 %1789, %v254_v26   ;;  %v397_v46 = vand.u32 4294901760, %v396_v43  ;;  %s242_s27 = scalar_lea.vmem [#allocation2], %s1612_s24 }
  0x1a   : > { %v255_v18 = vld [vmem:[%s251_s10] sm:$0xff]  ;;  %v408_v48 = vand.u32 4294901760, %v407_v47  ;;  %s1531_s29 = sshll.u32 %s242_s27, 4  ;;  %s1515_s10 = scalar_lea.sflag [#allocation3], %s240_s17  ;;  %s2150_s29 = int_to_ptr.vmem [resolvable:$true] %s1531_s29 }
  0x1b   : > { %v285_v22 = vcombine.high %v255_v18, %v255_v18  ;;  %v300_v23 = vsel %vm299_vm1, %v255_v18, 0  ;;  %s1808_s11 = scalar_lea.vmem %s2150_s29, 128  ;;  %s1814_s13 = scalar_lea.vmem %s1813_s12, 256 }
  0x1c   : > { %v2026_v24 = vand.u32 4294901760, %v300_v23  ;;  %p1809_p12 = scmp.ne.s32.totalorder %s2150_s29, %s1808_s11  ;;  %p1815_p1 = scmp.lt.s32.totalorder %s2150_s29, %s1813_s12 }
  0x1d   : > { %v302_v27 = vsel %vm299_vm1, %v285_v22, 0  ;;  %p1816_p2 = scmp.lt.s32.totalorder %s1814_s13, %s1808_s11 }
  0x1e   : > { %v304_v30 = vand.u32 4294901760, %v302_v27  ;;  %v422_v31 = vsub.f32 %v300_v23, %v2026_v24  ;;  %p1810_p13 = pnand %p1809_p12, %p1961_p4 }
  0x1f   : > { %p1817_p3 = por %p1816_p2, %p1815_p1 }
  0x20   : > { %v416_v34 = vsub.f32 %v302_v27, %v304_v30  ;;  %v423_v35 = vand.u32 4294901760, %v422_v31  ;;  %305 = vmatprep.subr.mxu1 %v304_v30  ;;  %p1811_p0 = pneg %p1810_p13 }
  0x21   : > { %307 = vmatpush1.msra.mxu1 %v2026_v24 }
  0x22   : > { %v417_v37 = vand.u32 4294901760, %v416_v34  ;;  %v424_v38 = vsub.f32 %v422_v31, %v423_v35  ;;  %376 = vmatmul.mubr.f32.vlgmr.msra.gmra.mrb[0].mxu1 %v375_v32  ;;  %p1818_p5 = pnand %p1817_p3, %p1811_p0 }
  0x23   : > { %381 = vmatprep.mubr.f32.mxu1 %v1888_v2 }
  0x24   : > { %v418_v41 = vsub.f32 %v416_v34, %v417_v37  ;;  %v425_v44 = vand.u32 4294901760, %v424_v38 }
  0x26   : > { %v419_v45 = vand.u32 4294901760, %v418_v41  ;;  %387 = vmatmul.mubr.f32.gmra.mrb[2].mxu1 %v386_v40 }
  0x27   : > { %392 = vmatprep.mubr.f32.mxu1 %v1888_v2 }
  0x28   : > { %420 = vmatprep.subr.mxu0 %v419_v45  ;;  %1670 = vmatprep.subr.mxu1 %v419_v45 }
  0x29   : > { %426 = vmatpush1.msra.mxu0 %v425_v44  ;;  %1671 = vmatpush1.msra.mxu1 %v425_v44 }
  0x2a   : > { %491 = vmatmul.mubr.f32.vlgmr.msra.gmra.mrb[0].mxu0 %v1994_v7  ;;  %520 = vmatprep.subr.mxu0 %v416_v34 }
  0x2b   : > { %523 = vmatpush1.msra.mxu0 %v422_v31  ;;  %586 = vmatprep.mubr.f32.mxu0 %v1888_v2 }
  0x2c   : > { %620 = vmatprep.subr.mxu0 %v304_v30  ;;  %398 = vmatmul.mubr.f32.gmra.mrb[4].mxu1 %v397_v46 }
  0x2d   : > { %403 = vmatprep.mubr.f32.mxu1 %v1888_v2 }
  0x30   : > { %409 = vmatmul.mubr.f32.gmra.mrb[6].mxu1 %v408_v48 }
  0x31   : > { %496 = vmatprep.mubr.f32.mxu1 %v1888_v2 }
  0x32   : > { %589 = vmatmul.mubr.f32.vlgmr.msra.gmra.mrb[0].mxu0 %v2006_v13 }
  0x33   : > { %594 = vmatprep.mubr.f32.mxu0 %v1888_v2  ;;  %622 = vmatpush1.msra.mxu0 %v2026_v24 }
  0x34   : > { %725 = vmatprep.subr.mxu0 %v417_v37  ;;  %498 = vmatmul.mubr.f32.vlgmr.msra.gmra.mrb[2].mxu1 %v1996_v8 }
  0x35   : > { %503 = vmatprep.mubr.f32.mxu1 %v1888_v2 }
  0x36   : > { %597 = vmatmul.mubr.f32.gmra.mrb[2].mxu0 %v2009_v14 }
  0x37   : > { %602 = vmatprep.mubr.f32.mxu0 %v1888_v2 }
  0x38   : > { %505 = vmatmul.mubr.f32.gmra.mrb[4].mxu1 %v2017_v16 }
  0x39   : > { %510 = vmatprep.mubr.f32.mxu1 %v1888_v2 }
  0x3a   : > { %605 = vmatmul.mubr.f32.gmra.mrb[4].mxu0 %v2036_v28 }
  0x3b   : > { %610 = vmatprep.mubr.f32.mxu0 %v1888_v2 }
  0x3c   : > { %512 = vmatmul.mubr.f32.gmra.mrb[6].mxu1 %v2038_v29 }
  0x3d   : > { %1038 = vmatprep.mubr.f32.mxu1 %v1888_v2 }
  0x3e   : > { %613 = vmatmul.mubr.f32.gmra.mrb[6].mxu0 %v405_v39 }
  0x3f   : > { %685 = vmatprep.mubr.f32.mxu0 %v1888_v2 }
  0x42   : > { %689 = vmatmul.mubr.f32.vlgmr.msra.gmra.mrb[0].mxu0 %v373_v20 }
  0x43   : > { %694 = vmatprep.mubr.f32.mxu0 %v1888_v2  ;;  %729 = vmatpush1.msra.mxu0 %v423_v35 }
  0x44   : > { %822 = vmatprep.subr.mxu0 %v304_v30 }
  0x46   : > { %698 = vmatmul.mubr.f32.gmra.mrb[2].mxu0 %v384_v21 }
  0x47   : > { %703 = vmatprep.mubr.f32.mxu0 %v1888_v2 }
  0x4a   : > { %707 = vmatmul.mubr.f32.gmra.mrb[4].mxu0 %v395_v36 }
  0x4b   : > { %712 = vmatprep.mubr.f32.mxu0 %v1888_v2 }
  0x4e   : > { %716 = vmatmul.mubr.f32.gmra.mrb[6].mxu0 %v406_v42 }
  0x4f   : > { %792 = vmatprep.mubr.f32.mxu0 %v1888_v2 }
  0x52   : > { %794 = vmatmul.mubr.f32.vlgmr.msra.gmra.mrb[0].mxu0 %v1994_v7 }
  0x53   : > { %799 = vmatprep.mubr.f32.mxu0 %v1888_v2  ;;  %824 = vmatpush1.msra.mxu0 %v2026_v24 }
  0x56   : > { %801 = vmatmul.mubr.f32.gmra.mrb[2].mxu0 %v1996_v8 }
  0x57   : > { %806 = vmatprep.mubr.f32.mxu0 %v1888_v2 }
  0x5a   : > { %808 = vmatmul.mubr.f32.gmra.mrb[4].mxu0 %v2017_v16 }
  0x5b   : > { %813 = vmatprep.mubr.f32.mxu0 %v1888_v2 }
  0x5e   : > { %815 = vmatmul.mubr.f32.gmra.mrb[6].mxu0 %v2038_v29 }
  0x5f   : > { %887 = vmatprep.mubr.f32.mxu0 %v1888_v2 }
  0x62   : > { %889 = vmatmul.mubr.f32.vlgmr.msra.gmra.mrb[0].mxu0 %v1994_v7 }
  0x63   : > { %894 = vmatprep.mubr.f32.mxu0 %v1888_v2 }
  0x66   : > { %896 = vmatmul.mubr.f32.gmra.mrb[2].mxu0 %v1996_v8  ;;  %v956_v8 = vld [vmem:[%s2198_s3] sm:$0xf] }
  0x67   : > { %901 = vmatprep.mubr.f32.mxu0 %v1888_v2  ;;  %v964_v14 = vsel %vm962_vm2, %v956_v8, 0 }
  0x68   : > { %v2095_v22 = vand.u32 4294901760, %v964_v14 }
  0x6a   : > { %903 = vmatmul.mubr.f32.gmra.mrb[4].mxu0 %v2017_v16  ;;  %v2098_v31 = vsub.f32 %v964_v14, %v2095_v22 }
  0x6b   : > { %908 = vmatprep.mubr.f32.mxu0 %v1888_v2 }
  0x6c   : > { %v1041_v41 = vand.u32 4294901760, %v2098_v31 }
  0x6e   : > { %910 = vmatmul.mubr.f32.gmra.mrb[6].mxu0 %v2038_v29 }
  0x90   : > { %v267_v57 = vpop.permute.xlu0 %266  ;;  %v277_v0 = vpop.permute.xlu1 %276 }
  0x94   : > { %v272_v60 = vpop.permute.xlu0 %271  ;;  %v282_v16 = vpop.permute.xlu1 %281 }
  0xf5   : > { %v377_v49 = vpop.f32.mrb[0].mxu1 }
  0xf6   : > { %v379_v50 = vpop.f32.mrb[1].mxu1  ;;  %v378_v58 = vadd.f32 %v377_v49, %v267_v57 }
  0xf7   : > { %v380_v59 = vadd.f32 %v379_v50, %v267_v57 }
 0x107   : > { %v499_v51 = vpop.f32.mrb[2].mxu1 }
 0x108   : > { %v501_v52 = vpop.f32.mrb[3].mxu1  ;;  %v1676_v3 = vadd.f32 %v499_v51, %v272_v60 }
 0x109   : > { %v1678_v5 = vadd.f32 %v501_v52, %v272_v60 }
 0x10b   : > { %v506_v53 = vpop.f32.mrb[4].mxu1 }
 0x10c   : > { %v508_v54 = vpop.f32.mrb[5].mxu1  ;;  %v1680_v12 = vadd.f32 %v506_v53, %v277_v0  ;;  %v2106_v53 = vsub.f32 %v2098_v31, %v1041_v41 }
 0x10d   : > { %v1682_v15 = vadd.f32 %v508_v54, %v277_v0 }
 0x10f   : > { %v513_v55 = vpop.f32.mrb[6].mxu1 }
 0x110   : > { %v515_v56 = vpop.f32.mrb[7].mxu1  ;;  %v1684_v23 = vadd.f32 %v513_v55, %v282_v16 }
 0x111   : > { %v1686_v25 = vadd.f32 %v515_v56, %v282_v16 }
 0x135   : > { %v890_v61 = vpop.f32.mrb[0].mxu0 }
 0x136   : > { %v1673_v62 = vadd.f32 %v890_v61, %v378_v58  ;;  %v892_v63 = vpop.f32.mrb[1].mxu0 }
 0x137   : > { %v1675_v1 = vadd.f32 %v892_v63, %v380_v59 }
 0x138   : > { %v924_v4 = vmul.f32 0.70710677, %v1673_v62  ;;  %v916_v35 = vmul.f32 0.5, %v1673_v62 }
 0x139   : > { %v925_v6 = vmul.f32 0.70710677, %v1675_v1  ;;  %v897_v7 = vpop.f32.mrb[2].mxu0  ;;  %v917_v38 = vmul.f32 0.5, %v1675_v1 }
 0x13a   : > { %1792 = verf.f32 %v924_v4  ;;  %v1677_v9 = vadd.f32 %v1676_v3, %v897_v7  ;;  %v899_v10 = vpop.f32.mrb[3].mxu0 }
 0x13b   : > { %1794 = verf.f32 %v925_v6  ;;  %v1679_v11 = vadd.f32 %v1678_v5, %v899_v10 }
 0x13c   : > { %v926_v13 = vmul.f32 0.70710677, %v1677_v9  ;;  %v918_v46 = vmul.f32 0.5, %v1677_v9 }
 0x13d   : > { %v927_v17 = vmul.f32 0.70710677, %v1679_v11  ;;  %v904_v18 = vpop.f32.mrb[4].mxu0  ;;  %v919_v48 = vmul.f32 0.5, %v1679_v11 }
 0x13e   : > { %1796 = verf.f32 %v926_v13  ;;  %v1681_v19 = vadd.f32 %v1680_v12, %v904_v18  ;;  %v906_v20 = vpop.f32.mrb[5].mxu0 }
 0x13f   : > { %1798 = verf.f32 %v927_v17  ;;  %v1683_v21 = vadd.f32 %v1682_v15, %v906_v20 }
 0x140   : > { %v928_v24 = vmul.f32 0.70710677, %v1681_v19  ;;  %v920_v56 = vmul.f32 0.5, %v1681_v19 }
 0x141   : > { %v929_v26 = vmul.f32 0.70710677, %v1683_v21  ;;  %v911_v27 = vpop.f32.mrb[6].mxu0  ;;  %v921_v57 = vmul.f32 0.5, %v1683_v21 }
 0x142   : > { %1800 = verf.f32 %v928_v24  ;;  %v1685_v28 = vadd.f32 %v1684_v23, %v911_v27  ;;  %v913_v29 = vpop.f32.mrb[7].mxu0 }
 0x143   : > { %1802 = verf.f32 %v929_v26  ;;  %v1687_v30 = vadd.f32 %v1686_v25, %v913_v29 }
 0x144   : > { %v1793_v32 = vpop.eup %1792  ;;  %v930_v33 = vmul.f32 0.70710677, %v1685_v28  ;;  %v922_v63 = vmul.f32 0.5, %v1685_v28 }
 0x145   : > { %v1795_v34 = vpop.eup %1794  ;;  %v940_v36 = vadd.f32 1.0, %v1793_v32  ;;  %v931_v37 = vmul.f32 0.70710677, %v1687_v30  ;;  %v923_v1 = vmul.f32 0.5, %v1687_v30 }
 0x146   : > { %v941_v39 = vadd.f32 1.0, %v1795_v34  ;;  %1804 = verf.f32 %v930_v33 }
 0x147   : > { %v948_v40 = vmul.f32 %v940_v36, %v916_v35  ;;  %1806 = verf.f32 %v931_v37 }
 0x148   : > { %v1797_v42 = vpop.eup %1796  ;;  %v949_v43 = vmul.f32 %v941_v39, %v917_v38 }
 0x149   : > { %v1799_v44 = vpop.eup %1798  ;;  %v968_v45 = vand.u32 4294901760, %v948_v40  ;;  %v942_v47 = vadd.f32 1.0, %v1797_v42 }
 0x14a   : > { %v943_v49 = vadd.f32 1.0, %v1799_v44  ;;  %v966_v50 = vand.u32 4294901760, %v949_v43 }
 0x14b   : > { %v2101_v51 = vsub.f32 %v948_v40, %v968_v45  ;;  %v950_v52 = vmul.f32 %v942_v47, %v918_v46 }
 0x14c   : > { %v1801_v54 = vpop.eup %1800  ;;  %v951_v55 = vmul.f32 %v943_v49, %v919_v48  ;;  %v2108_v58 = vsub.f32 %v949_v43, %v966_v50 }
 0x14d   : > { %v1803_v59 = vpop.eup %1802  ;;  %v1058_v60 = vand.u32 4294901760, %v2101_v51  ;;  %v972_v61 = vand.u32 4294901760, %v950_v52  ;;  %v944_v62 = vadd.f32 1.0, %v1801_v54 }
 0x14e   : > { %v945_v0 = vadd.f32 1.0, %v1803_v59  ;;  %v970_v3 = vand.u32 4294901760, %v951_v55  ;;  %v1052_v4 = vand.u32 4294901760, %v2108_v58 }
 0x14f   : > { %v2112_v5 = vsub.f32 %v950_v52, %v972_v61  ;;  %v952_v6 = vmul.f32 %v944_v62, %v920_v56  ;;  %v2114_v7 = vpack.c.bf16 %v972_v61, %v968_v45  ;;  %v1059_v8 = vsub.f32 %v2101_v51, %v1058_v60 }
 0x150   : > { %v1805_v9 = vpop.eup %1804  ;;  %v953_v10 = vmul.f32 %v945_v0, %v921_v57  ;;  %v2117_v11 = vpack.c.bf16 %v970_v3, %v966_v50  ;;  %v1063_v12 = vsub.f32 %v951_v55, %v970_v3  ;;  %v1053_v13 = vsub.f32 %v2108_v58, %v1052_v4 }
 0x151   : > { %v1807_v14 = vpop.eup %1806  ;;  %v1070_v15 = vand.u32 4294901760, %v2112_v5  ;;  %v976_v16 = vand.u32 4294901760, %v952_v6  ;;  %v946_v17 = vadd.f32 1.0, %v1805_v9  ;;  %v1060_v18 = vand.u32 4294901760, %v1059_v8 }
 0x152   : > { %v947_v19 = vadd.f32 1.0, %v1807_v14  ;;  %1623 = vmatprep.subr.bf16.mxu1 %v2117_v11  ;;  %v974_v20 = vand.u32 4294901760, %v953_v10  ;;  %v1054_v21 = vand.u32 4294901760, %v1053_v13  ;;  %v1064_v23 = vand.u32 4294901760, %v1063_v12 }
 0x153   : > { %v1081_v24 = vsub.f32 %v952_v6, %v976_v16  ;;  %v954_v25 = vmul.f32 %v946_v17, %v922_v63  ;;  %1625 = vmatpush1.bf16.msra.mxu1 %v2114_v7  ;;  %v1071_v26 = vsub.f32 %v2112_v5, %v1070_v15  ;;  %v1638_v27 = vpack.c.bf16 %v1063_v12, %v2108_v58 }
 0x154   : > { %v955_v28 = vmul.f32 %v947_v19, %v923_v1  ;;  %v1075_v29 = vsub.f32 %v953_v10, %v974_v20  ;;  %v1065_v30 = vsub.f32 %v1063_v12, %v1064_v23  ;;  %v1640_v32 = vpack.c.bf16 %v2112_v5, %v2101_v51 }
 0x155   : > { %v1082_v33 = vand.u32 4294901760, %v1081_v24  ;;  %v980_v34 = vand.u32 4294901760, %v954_v25  ;;  %v1072_v35 = vand.u32 4294901760, %v1071_v26  ;;  %v1654_v36 = vpack.c.bf16 %v1064_v23, %v1052_v4 }
 0x156   : > { %v978_v37 = vand.u32 4294901760, %v955_v28  ;;  %v1066_v38 = vand.u32 4294901760, %v1065_v30  ;;  %v1076_v39 = vand.u32 4294901760, %v1075_v29  ;;  %v1656_v40 = vpack.c.bf16 %v1070_v15, %v1058_v60 }
 0x157   : > { %v1093_v42 = vsub.f32 %v954_v25, %v980_v34  ;;  %v1628_v43 = vpack.c.bf16 %v980_v34, %v976_v16  ;;  %v1632_v44 = vpack.c.bf16 %v1072_v35, %v1060_v18  ;;  %v1083_v49 = vsub.f32 %v1081_v24, %v1082_v33 }
 0x158   : > { %v1626_v45 = vpack.c.bf16 %v978_v37, %v974_v20  ;;  %v1087_v46 = vsub.f32 %v955_v28, %v978_v37  ;;  %v1630_v47 = vpack.c.bf16 %v1066_v38, %v1054_v21  ;;  %v1043_v51 = vand.u32 4294901760, %v2106_v53 }
 0x159   : > { %v1094_v48 = vand.u32 4294901760, %v1093_v42  ;;  %v1644_v50 = vpack.c.bf16 %v1093_v42, %v1081_v24  ;;  %v1077_v52 = vsub.f32 %v1075_v29, %v1076_v39  ;;  %v1084_v60 = vand.u32 4294901760, %v1083_v49 }
 0x15a   : > { %1627 = vmatprep.subr.bf16.mxu1 %v1626_v45  ;;  %v1088_v54 = vand.u32 4294901760, %v1087_v46  ;;  %v1642_v55 = vpack.c.bf16 %v1087_v46, %v1075_v29 }
 0x15b   : > { %1629 = vmatpush1.bf16.msra.mxu1 %v1628_v43  ;;  %v1095_v56 = vsub.f32 %v1093_v42, %v1094_v48  ;;  %v1660_v57 = vpack.c.bf16 %v1094_v48, %v1082_v33  ;;  %v1078_v62 = vand.u32 4294901760, %v1077_v52 }
 0x15c   : > { %1631 = vmatprep.subr.bf16.mxu1 %v1630_v47  ;;  %v1089_v58 = vsub.f32 %v1087_v46, %v1088_v54  ;;  %v1658_v59 = vpack.c.bf16 %v1088_v54, %v1076_v39 }
 0x15d   : > { %v1096_v61 = vand.u32 4294901760, %v1095_v56 }
 0x15e   : > { %1044 = vmatmul.mubr.f32.vlgmr.msra.gmra.mrb[8].mxu1 %v1043_v51  ;;  %v1090_v63 = vand.u32 4294901760, %v1089_v58 }
 0x15f   : > { %1633 = vmatpush1.bf16.msra.mxu1 %v1632_v44  ;;  %v1636_v0 = vpack.c.bf16 %v1096_v61, %v1084_v60  ;;  %1154 = vmatprep.mubr.f32.mxu1 %v1888_v2 }
 0x160   : > { %v1634_v1 = vpack.c.bf16 %v1090_v63, %v1078_v62 }
 0x162   : > { %1635 = vmatprep.subr.bf16.mxu1 %v1634_v1 }
 0x163   : > { %1637 = vmatpush1.bf16.msra.mxu1 %v1636_v0 }
 0x164   : > { %1639 = vmatprep.subr.bf16.mxu1 %v1638_v27 }
 0x166   : > { %1156 = vmatmul.mubr.f32.vlgmr.msra.gmra.mrb[8].mxu1 %v2095_v22 }
 0x167   : > { %1641 = vmatpush1.bf16.msra.mxu1 %v1640_v32  ;;  %1242 = vmatprep.mubr.f32.mxu1 %v1888_v2 }
 0x168   : > { %1643 = vmatprep.subr.bf16.mxu1 %v1642_v55 }
 0x16b   : > { %1645 = vmatpush1.bf16.msra.mxu1 %v1644_v50 }
 0x16c   : > { %1647 = vmatprep.subr.bf16.mxu1 %v2117_v11 }
 0x16e   : > { %1245 = vmatmul.mubr.f32.vlgmr.msra.gmra.mrb[8].mxu1 %v2098_v31  ;;  %v960_v31 = vpop.permute.xlu0 %959 }
 0x16f   : > { %1649 = vmatpush1.bf16.msra.mxu1 %v2114_v7  ;;  %1323 = vmatprep.mubr.f32.mxu1 %v1888_v2 }
 0x170   : > { %1651 = vmatprep.subr.bf16.mxu1 %v1626_v45 }
 0x173   : > { %1653 = vmatpush1.bf16.msra.mxu1 %v1628_v43 }
 0x174   : > { %1655 = vmatprep.subr.bf16.mxu1 %v1654_v36 }
 0x176   : > { %1327 = vmatmul.mubr.f32.vlgmr.msra.gmra.mrb[8].mxu1 %v1041_v41 }
 0x177   : > { %1657 = vmatpush1.bf16.msra.mxu1 %v1656_v40  ;;  %1421 = vmatprep.mubr.f32.mxu1 %v1888_v2 }
 0x178   : > { %1659 = vmatprep.subr.bf16.mxu1 %v1658_v59 }
 0x17b   : > { %1661 = vmatpush1.bf16.msra.mxu1 %v1660_v57 }
 0x17c   : > { %1663 = vmatprep.subr.bf16.mxu1 %v2117_v11 }
 0x17e   : > { %1423 = vmatmul.mubr.f32.vlgmr.msra.gmra.mrb[8].mxu1 %v2095_v22 }
 0x17f   : > { %1665 = vmatpush1.bf16.msra.mxu1 %v2114_v7  ;;  %1501 = vmatprep.mubr.f32.mxu1 %v1888_v2 }
 0x180   : > { %1667 = vmatprep.subr.bf16.mxu1 %v1626_v45 }
 0x183   : > { %1669 = vmatpush1.bf16.msra.mxu1 %v1628_v43 }
 0x186   : > { %1503 = vmatmul.mubr.f32.vlgmr.msra.gmra.mrb[8].mxu1 %v2095_v22 }
 0x259   : > { %v1504_v41 = vpop.f32.mrb[8].mxu1 }
 0x25a   : > { %v1688_v53 = vadd.f32 %v1504_v41, %v960_v31  ;;  %v1506_v3 = vpop.f32.mrb[9].mxu1 }
 0x25b   : > { %v1689_v4 = vadd.f32 %v1506_v3, %v960_v31 }
 0x25d   : > { %v1511_v5 = vcombine.low %v1688_v53, %v1689_v4 }
 0x25f   : > { %1513 = vst [vmem:[%s242_s27] sm:$0xff] %v1511_v5 }
 0x260   : > { %1821 = shalt.err (!%p1818_p5)
}
 0x261   : > { %s1822_s14 = scalar_lea.hbm %s2148_s9, 128  ;;  %s1826_s17 = scalar_lea.hbm %s2200_s5, 256 }
 0x262   : > { %p1823_p6 = scmp.ne.s32.totalorder %s2148_s9, %s1822_s14  ;;  %p1827_p10 = scmp.lt.u32.totalorder %s2148_s9, %s2200_s5 }
 0x263   : > { %p1828_p11 = scmp.lt.u32.totalorder %s1826_s17, %s1822_s14  ;;  %p1830_p13 = scmp.lt.u32.totalorder %s1822_s14, %s2148_s9 }
 0x264   : > { %p1824_p7 = pnand %p1823_p6, %p1961_p4 }
 0x265   : > { %p1829_p12 = por %p1828_p11, %p1827_p10 }
 0x266   : > { %p1825_p9 = pneg %p1824_p7 }
 0x267   : > { %p1831_p0 = por %p1830_p13, %p1829_p12 }
 0x269   : > { %p1832_p1 = pnand %p1831_p0, %p1825_p9 }
 0x26b   : > { %1835 = shalt.err (!%p1832_p1)
}
 0x26c   : > { %1732 = dma.vmem_to_hbm [thread:$0]  (%p1961_p4), %s2150_s29, 128, %s2148_s9, %s1515_s10  }
 0x26d PF: > { %p1738_p2 = scmp.ge.s32.totalorder %s1886_s23, 2  ;;  %s1543_s27 = sand.u32 1, %s1866_s18  }
 0x26e   : > { %s1544_s7 = scalar_lea.sflag [#allocation3], %s1543_s27 }
 0x26f   : > { %p1735_p3 = pnand %p1738_p2, %p1968_p8 }
 0x271   : > { %1861 = dma.done.wait (!%p1735_p3), %s1544_s7, 128  }
 0x272   : > { %1863 = vsyncadd (!%p1735_p3), %s1544_s7, 4294967168  ;;  %s18_s23 = sadd.s32 1, %s1886_s23   ;;  %s2203_s18 = smov %s1870_s19 }
 0x273   : > { %p15_p5 = scmp.ge.s32.totalorder %s18_s23, 4   ;;  %s2204_s19 = smov %s1874_s20 }
 0x274   : > { %s2205_s20 = smov %s1974_s6  ;;  %s2206_s21 = smov %s1882_s22 }
 0x275   : > { %s2207_s22 = smov %s2209_s26  ;;  %17 = sbr.rel (!%p15_p5) target bundleno = 4 (0x4), region = 75 }
 0x27c   :  { %1549 = vsyncpa [#allocation3], 1 }
 0x27d   :  { %1551 = vsyncpa [#allocation3 + $0x1], 1 }

</bundles_post_ra>
